<compile_context>
chip_gen: v6e
topology: v6e:2x2x1
jax: 0.10.0
libtpu: 0.0.40
codegen_flags: <defaults>
</compile_context>

<pallas_src>
import functools

import jax
import jax.numpy as jnp
from jax.experimental import pallas as pl
from jax.experimental.pallas import tpu as pltpu


def _round_up(a, b):
    return (a + b - 1) // b * b


def _pick_row_tile(H, W, cap=256):
    """Largest divisor of H whose tile (th*W rows of the im2col matmul) fits budget."""
    best = 1
    for t in range(1, H + 1):
        if H % t == 0 and t * W <= cap:
            best = t
    return best


def _pad2(a, rows, cols):
    return jnp.pad(a, ((0, rows - a.shape[0]), (0, cols - a.shape[1])))


def _pad1(a, n):
    return jnp.pad(a, (0, n - a.shape[0])).reshape(1, n)


# ---------------------------------------------------------------------------
# Kernel 1: conv1(1x1)+BN1+ReLU  ->  conv2(3x3)+BN2+ReLU  ->  conv3(1x1)+BN3
# plus accumulation of per-channel sums (SE squeeze) into a per-image
# resident output block.
# Grid = (N, row_tiles).  conv1 is recomputed with a 1-row halo so the 3x3
# needs no intermediate HBM tensor; the 9 taps are concatenated along
# channels to form a single deep-K matmul: (th*W, 9*Cmid) @ (9*Cmid, Cmid).
# ---------------------------------------------------------------------------
def conv_stack_se_kernel(xp_ref, mask_ref, w1_ref, s1_ref, b1_ref,
                         w9_ref, s2_ref, b2_ref, w3_ref, s3_ref, b3_ref,
                         y_ref, sum_ref):
    th = y_ref.shape[1]
    W = y_ref.shape[2]
    Wp = xp_ref.shape[2]            # W + 2
    cin = xp_ref.shape[3]
    PP = w1_ref.shape[1]
    r = pl.program_id(1)
    row0 = r * th

    # ---- conv1 (1x1) + BN1 + ReLU on the row band incl. 1-row halo ----------
    band = xp_ref[0, pl.ds(row0, th + 2), :, :]                 # (th+2, W+2, cin)
    h = jnp.dot(band.reshape((th + 2) * Wp, cin), w1_ref[...],
                preferred_element_type=jnp.float32)
    h = jnp.maximum(h * s1_ref[...] + b1_ref[...], 0.0)
    h = h.reshape(th + 2, Wp, PP)
    # zero the spatial-pad ring (3x3 conv pads the conv1 *output* with zeros)
    h = h * mask_ref[pl.ds(row0, th + 2), :, :]                 # (th+2, W+2, 1)

    # ---- im2col: 9 shifted taps -> one deep-K matmul ------------------------
    patches = []
    for dy in range(3):
        for dx in range(3):
            patches.append(h[dy:dy + th, dx:dx + W, :].reshape(th * W, PP))
    x9 = jnp.concatenate(patches, axis=-1)                      # (th*W, 9*PP)

    g = jnp.dot(x9, w9_ref[...], preferred_element_type=jnp.float32)
    g = jnp.maximum(g * s2_ref[...] + b2_ref[...], 0.0)         # BN2 + ReLU

    # ---- conv3 (1x1) + BN3 (no ReLU) ----------------------------------------
    y = jnp.dot(g, w3_ref[...], preferred_element_type=jnp.float32)
    y = y * s3_ref[...] + b3_ref[...]

    y_ref[...] = y.reshape(y_ref.shape).astype(y_ref.dtype)

    # ---- SE squeeze: accumulate per-image channel sums ----------------------
    @pl.when(r == 0)
    def _():
        sum_ref[...] = jnp.zeros_like(sum_ref)

    sum_ref[...] += jnp.sum(y, axis=0).reshape(sum_ref.shape)


def fused_conv_stack(xp, mask, w1, s1, b1, w9, s2, b2, w3, s3, b3, H, W, th):
    N, Hp2, Wp2, cin = xp.shape
    PP = w1.shape[1]
    CP = w3.shape[1]
    R = H // th
    return pl.pallas_call(
        conv_stack_se_kernel,
        out_shape=(jax.ShapeDtypeStruct((N, H, W, CP), jnp.float32),
                   jax.ShapeDtypeStruct((N, 1, CP), jnp.float32)),
        grid=(N, R),
        in_specs=[
            pl.BlockSpec((1, Hp2, Wp2, cin), lambda n, r: (n, 0, 0, 0)),
            pl.BlockSpec((Hp2, Wp2, 1), lambda n, r: (0, 0, 0)),
            pl.BlockSpec(w1.shape, lambda n, r: (0, 0)),
            pl.BlockSpec((1, PP), lambda n, r: (0, 0)),
            pl.BlockSpec((1, PP), lambda n, r: (0, 0)),
            pl.BlockSpec(w9.shape, lambda n, r: (0, 0)),
            pl.BlockSpec((1, PP), lambda n, r: (0, 0)),
            pl.BlockSpec((1, PP), lambda n, r: (0, 0)),
            pl.BlockSpec(w3.shape, lambda n, r: (0, 0)),
            pl.BlockSpec((1, CP), lambda n, r: (0, 0)),
            pl.BlockSpec((1, CP), lambda n, r: (0, 0)),
        ],
        out_specs=(
            pl.BlockSpec((1, th, W, CP), lambda n, r: (n, r, 0, 0)),
            pl.BlockSpec((1, 1, CP), lambda n, r: (n, 0, 0)),
        ),
        compiler_params=pltpu.CompilerParams(
            dimension_semantics=("parallel", "arbitrary")),
    )(xp, mask, w1, s1, b1, w9, s2, b2, w3, s3, b3)


# ---------------------------------------------------------------------------
# Kernel 2: SE excitation FCs (tiny, recomputed per tile so both grid axes
# stay "parallel") + excite * y + residual + ReLU.  Pure streaming pass.
# ---------------------------------------------------------------------------
def se_excite_res_relu_kernel(sum_ref, fc1_ref, fc2_ref, y_ref, res_ref, o_ref,
                              *, inv_hw):
    CP = sum_ref.shape[2]
    m = sum_ref[...].reshape(1, CP) * inv_hw
    h = jnp.maximum(jnp.dot(m, fc1_ref[...],
                            preferred_element_type=jnp.float32), 0.0)
    s = jax.nn.sigmoid(jnp.dot(h, fc2_ref[...],
                               preferred_element_type=jnp.float32))
    s = s.reshape(1, 1, 1, CP)
    o_ref[...] = jnp.maximum(y_ref[...] * s + res_ref[...], 0.0).astype(o_ref.dtype)


def se_excite_residual_relu(sums, fc1, fc2, y, res, *, hw, th):
    N, H, W, CP = y.shape
    HdP = fc1.shape[1]
    R = H // th
    return pl.pallas_call(
        functools.partial(se_excite_res_relu_kernel, inv_hw=1.0 / float(hw)),
        out_shape=jax.ShapeDtypeStruct((N, H, W, CP), jnp.float32),
        grid=(N, R),
        in_specs=[
            pl.BlockSpec((1, 1, CP), lambda n, r: (n, 0, 0)),
            pl.BlockSpec((CP, HdP), lambda n, r: (0, 0)),
            pl.BlockSpec((HdP, CP), lambda n, r: (0, 0)),
            pl.BlockSpec((1, th, W, CP), lambda n, r: (n, r, 0, 0)),
            pl.BlockSpec((1, th, W, CP), lambda n, r: (n, r, 0, 0)),
        ],
        out_specs=pl.BlockSpec((1, th, W, CP), lambda n, r: (n, r, 0, 0)),
        compiler_params=pltpu.CompilerParams(
            dimension_semantics=("parallel", "parallel")),
    )(sums, fc1, fc2, y, res)


# ---------------------------------------------------------------------------
# Glue: full SEBottleneck forward (NCHW in / NCHW out)
# ---------------------------------------------------------------------------
def se_bottleneck_forward(x_nchw, p):
    x = jnp.transpose(x_nchw, (0, 2, 3, 1))            # NCHW -> NHWC
    N, H, W, cin = x.shape
    planes = p["w1"].shape[1]
    C = planes * 4
    hidden = p["fc1"].shape[1]
    assert cin == C, "no-downsample path requires inplanes == planes*4"

    PP = _round_up(planes, 128)                         # padded mid channels
    CP = _round_up(C, 128)                              # padded in/out channels
    HdP = _round_up(hidden, 128)                        # padded SE hidden

    # ---- lane-dense (128-padded) parameter layouts -------------------------
    w1p = _pad2(p["w1"], CP, PP)                                            # (CP, PP)
    w9p = jnp.pad(p["w2"],
                  ((0, 0), (0, 0), (0, PP - planes), (0, PP - planes))
                  ).reshape(9 * PP, PP)                                     # (9*PP, PP)
    w3p = _pad2(p["w3"], PP, CP)                                            # (PP, CP)
    s1p, b1p = _pad1(p["s1"], PP), _pad1(p["b1"], PP)
    s2p, b2p = _pad1(p["s2"], PP), _pad1(p["b2"], PP)
    s3p, b3p = _pad1(p["s3"], CP), _pad1(p["b3"], CP)
    fc1p = _pad2(p["fc1"], CP, HdP)
    fc2p = _pad2(p["fc2"], HdP, CP)

    # ---- pad activations: channels to lane-dense, spatial by 1 for the 3x3 --
    x_p = jnp.pad(x, ((0, 0), (0, 0), (0, 0), (0, CP - cin)))   # residual (N,H,W,CP)
    x_sp = jnp.pad(x_p, ((0, 0), (1, 1), (1, 1), (0, 0)))       # (N,H+2,W+2,CP)

    # interior mask: 1 inside the HxW image, 0 on the 1-pixel spatial pad ring
    ri = jnp.arange(H + 2)[:, None]
    ci = jnp.arange(W + 2)[None, :]
    mask = (((ri >= 1) & (ri <= H) & (ci >= 1) & (ci <= W))
            .astype(jnp.float32))[:, :, None]                   # (H+2,W+2,1)

    th = _pick_row_tile(H, W)

    # ---- conv1+BN1+ReLU -> conv2(3x3)+BN2+ReLU -> conv3+BN3 + SE squeeze ----
    y, sums = fused_conv_stack(x_sp, mask, w1p, s1p, b1p, w9p, s2p, b2p,
                               w3p, s3p, b3p, H, W, th)

    # ---- SE excitation + residual (downsample is None) + ReLU ---------------
    out = se_excite_residual_relu(sums, fc1p, fc2p, y, x_p, hw=H * W, th=th)

    out = out[..., :C]
    return jnp.transpose(out, (0, 3, 1, 2))                      # NHWC -> NCHW


# ---------------------------------------------------------------------------
# Pure-JAX reference (for correctness check)
# ---------------------------------------------------------------------------
def reference_forward(x_nchw, p):
    x = jnp.transpose(x_nchw, (0, 2, 3, 1))
    out = jax.nn.relu(jnp.einsum("nhwc,cd->nhwd", x, p["w1"]) * p["s1"] + p["b1"])
    out = jax.lax.conv_general_dilated(
        out, p["w2"], window_strides=(1, 1), padding="SAME",
        dimension_numbers=("NHWC", "HWIO", "NHWC"))
    out = jax.nn.relu(out * p["s2"] + p["b2"])
    out = jnp.einsum("nhwc,cd->nhwd", out, p["w3"]) * p["s3"] + p["b3"]
    m = jnp.mean(out, axis=(1, 2))
    s = jax.nn.sigmoid(jax.nn.relu(m @ p["fc1"]) @ p["fc2"])
    out = jax.nn.relu(out * s[:, None, None, :] + x)
    return jnp.transpose(out, (0, 3, 1, 2))


# ---------------------------------------------------------------------------
# Deterministic synthetic parameters (eval-mode BN folded to scale/bias)
# ---------------------------------------------------------------------------
def init_params(key, inplanes, planes, reduction):
    C = planes * 4
    hidden = max(C // reduction, 1)
    ks = jax.random.split(key, 8)

    def bn_fold(k, c, eps=1e-5):
        kg, kb, km, kv = jax.random.split(k, 4)
        gamma = 1.0 + 0.1 * jax.random.normal(kg, (c,), jnp.float32)
        beta = 0.1 * jax.random.normal(kb, (c,), jnp.float32)
        mean = 0.1 * jax.random.normal(km, (c,), jnp.float32)
        var = 1.0 + 0.1 * jnp.abs(jax.random.normal(kv, (c,), jnp.float32))
        scale = gamma * jax.lax.rsqrt(var + eps)
        bias = beta - mean * scale
        return scale, bias

    s1, b1 = bn_fold(ks[0], planes)
    s2, b2 = bn_fold(ks[1], planes)
    s3, b3 = bn_fold(ks[2], C)
    return dict(
        w1=0.1 * jax.random.normal(ks[3], (inplanes, planes), jnp.float32),
        w2=0.1 * jax.random.normal(ks[4], (3, 3, planes, planes), jnp.float32),
        w3=0.1 * jax.random.normal(ks[5], (planes, C), jnp.float32),
        fc1=0.1 * jax.random.normal(ks[6], (C, hidden), jnp.float32),
        fc2=0.1 * jax.random.normal(ks[7], (hidden, C), jnp.float32),
        s1=s1, b1=b1, s2=s2, b2=b2, s3=s3, b3=b3,
    )


if __name__ == "__main__":
    # SEBottleneck(inplanes=32, planes=8, stride=1, downsample=None, reduction=16)
    N, inplanes, H, W = 2, 32, 8, 8
    planes, reduction = 8, 16          # planes*4 == inplanes -> valid residual add

    key = jax.random.PRNGKey(0)
    kx, kp = jax.random.split(key)
    x = jax.random.normal(kx, (N, inplanes, H, W), jnp.float32)   # NCHW like PyTorch
    params = init_params(kp, inplanes, planes, reduction)

    out = jax.block_until_ready(jax.jit(se_bottleneck_forward)(x, params))
    ref = jax.block_until_ready(reference_forward(x, params))

    assert out.shape == (N, planes * 4, H, W)
    assert jnp.max(jnp.abs(out - ref)) < 1e-3, "mismatch vs reference"

    print("KERNEL_OK")
</pallas_src>

<mosaic_0001>
module attributes {stable_mosaic.version = 11 : i64} {
  func.func @conv_stack_se_kernel(%arg0: i32, %arg1: i32, %arg2: memref<1x10x10x128xf32, #tpu.memory_space<vmem>>, %arg3: memref<10x10x1xf32, #tpu.memory_space<vmem>>, %arg4: memref<128x128xf32, #tpu.memory_space<vmem>>, %arg5: memref<1x128xf32, #tpu.memory_space<vmem>>, %arg6: memref<1x128xf32, #tpu.memory_space<vmem>>, %arg7: memref<1152x128xf32, #tpu.memory_space<vmem>>, %arg8: memref<1x128xf32, #tpu.memory_space<vmem>>, %arg9: memref<1x128xf32, #tpu.memory_space<vmem>>, %arg10: memref<128x128xf32, #tpu.memory_space<vmem>>, %arg11: memref<1x128xf32, #tpu.memory_space<vmem>>, %arg12: memref<1x128xf32, #tpu.memory_space<vmem>>, %arg13: memref<1x8x8x128xf32, #tpu.memory_space<vmem>>, %arg14: memref<1x1x128xf32, #tpu.memory_space<vmem>>) attributes {dimension_semantics = [#tpu.dimension_semantics<parallel>, #tpu.dimension_semantics<arbitrary>], iteration_bounds = array<i64: 2, 1>, scalar_prefetch = 0 : i64, scratch_operands = 0 : i64, tpu.core_type = #tpu.core_type<tc>, window_params = [{transform_indices = @transform_0, window_bounds = array<i64: 1, 10, 10, 128>}, {pipeline_mode = #tpu.pipeline_mode<synchronous>, transform_indices = @transform_1, window_bounds = array<i64: 10, 10, 1>}, {pipeline_mode = #tpu.pipeline_mode<synchronous>, transform_indices = @transform_2, window_bounds = array<i64: 128, 128>}, {pipeline_mode = #tpu.pipeline_mode<synchronous>, transform_indices = @transform_3, window_bounds = array<i64: 1, 128>}, {pipeline_mode = #tpu.pipeline_mode<synchronous>, transform_indices = @transform_4, window_bounds = array<i64: 1, 128>}, {pipeline_mode = #tpu.pipeline_mode<synchronous>, transform_indices = @transform_5, window_bounds = array<i64: 1152, 128>}, {pipeline_mode = #tpu.pipeline_mode<synchronous>, transform_indices = @transform_6, window_bounds = array<i64: 1, 128>}, {pipeline_mode = #tpu.pipeline_mode<synchronous>, transform_indices = @transform_7, window_bounds = array<i64: 1, 128>}, {pipeline_mode = #tpu.pipeline_mode<synchronous>, transform_indices = @transform_8, window_bounds = array<i64: 128, 128>}, {pipeline_mode = #tpu.pipeline_mode<synchronous>, transform_indices = @transform_9, window_bounds = array<i64: 1, 128>}, {pipeline_mode = #tpu.pipeline_mode<synchronous>, transform_indices = @transform_10, window_bounds = array<i64: 1, 128>}, {transform_indices = @transform_11, window_bounds = array<i64: 1, 8, 8, 128>}, {transform_indices = @transform_12, window_bounds = array<i64: 1, 1, 128>}]} {
    %c8_i32 = arith.constant 8 : i32
    %0 = arith.muli %arg1, %c8_i32 : i32
    %c0 = arith.constant 0 : index
    %1 = arith.index_cast %0 : i32 to index
    %c0_0 = arith.constant 0 : index
    %c0_1 = arith.constant 0 : index
    %2 = vector.load %arg2[%c0, %1, %c0_0, %c0_1] : memref<1x10x10x128xf32, #tpu.memory_space<vmem>>, vector<1x10x10x128xf32>
    %3 = vector.shape_cast %2 : vector<1x10x10x128xf32> to vector<10x10x128xf32>
    %4 = vector.shape_cast %3 : vector<10x10x128xf32> to vector<100x128xf32>
    %c0_2 = arith.constant 0 : index
    %c0_3 = arith.constant 0 : index
    %5 = vector.load %arg4[%c0_2, %c0_3] : memref<128x128xf32, #tpu.memory_space<vmem>>, vector<128x128xf32>
    %cst = arith.constant dense<0.000000e+00> : vector<100x128xf32>
    %6 = tpu.matmul %4, %5, %cst {dimension_numbers = #tpu.dot_dimension_numbers<[1], [0], [0], [1], [0, 0, 1, 1], [], []>} : vector<100x128xf32>, vector<128x128xf32>, vector<100x128xf32> -> vector<100x128xf32>
    %c0_4 = arith.constant 0 : index
    %c0_5 = arith.constant 0 : index
    %7 = vector.load %arg5[%c0_4, %c0_5] : memref<1x128xf32, #tpu.memory_space<vmem>>, vector<1x128xf32>
    %8 = vector.broadcast %7 : vector<1x128xf32> to vector<100x128xf32>
    %9 = arith.mulf %6, %8 : vector<100x128xf32>
    %c0_6 = arith.constant 0 : index
    %c0_7 = arith.constant 0 : index
    %10 = vector.load %arg6[%c0_6, %c0_7] : memref<1x128xf32, #tpu.memory_space<vmem>>, vector<1x128xf32>
    %11 = vector.broadcast %10 : vector<1x128xf32> to vector<100x128xf32>
    %12 = arith.addf %9, %11 : vector<100x128xf32>
    %cst_8 = arith.constant 0.000000e+00 : f32
    %13 = vector.broadcast %cst_8 : f32 to vector<100x128xf32>
    %14 = arith.maximumf %12, %13 : vector<100x128xf32>
    %15 = vector.shape_cast %14 : vector<100x128xf32> to vector<10x10x128xf32>
    %16 = arith.index_cast %0 : i32 to index
    %c0_9 = arith.constant 0 : index
    %c0_10 = arith.constant 0 : index
    %17 = vector.load %arg3[%16, %c0_9, %c0_10] : memref<10x10x1xf32, #tpu.memory_space<vmem>>, vector<10x10x1xf32>
    %18 = vector.broadcast %17 : vector<10x10x1xf32> to vector<10x10x128xf32>
    %19 = arith.mulf %15, %18 : vector<10x10x128xf32>
    %20 = vector.extract_strided_slice %19 {offsets = [0, 0, 0], sizes = [8, 8, 128], strides = [1, 1, 1]} : vector<10x10x128xf32> to vector<8x8x128xf32>
    %21 = vector.shape_cast %20 : vector<8x8x128xf32> to vector<64x128xf32>
    %22 = vector.extract_strided_slice %19 {offsets = [0, 1, 0], sizes = [8, 8, 128], strides = [1, 1, 1]} : vector<10x10x128xf32> to vector<8x8x128xf32>
    %23 = vector.shape_cast %22 : vector<8x8x128xf32> to vector<64x128xf32>
    %24 = vector.extract_strided_slice %19 {offsets = [0, 2, 0], sizes = [8, 8, 128], strides = [1, 1, 1]} : vector<10x10x128xf32> to vector<8x8x128xf32>
    %25 = vector.shape_cast %24 : vector<8x8x128xf32> to vector<64x128xf32>
    %26 = vector.extract_strided_slice %19 {offsets = [1, 0, 0], sizes = [8, 8, 128], strides = [1, 1, 1]} : vector<10x10x128xf32> to vector<8x8x128xf32>
    %27 = vector.shape_cast %26 : vector<8x8x128xf32> to vector<64x128xf32>
    %28 = vector.extract_strided_slice %19 {offsets = [1, 1, 0], sizes = [8, 8, 128], strides = [1, 1, 1]} : vector<10x10x128xf32> to vector<8x8x128xf32>
    %29 = vector.shape_cast %28 : vector<8x8x128xf32> to vector<64x128xf32>
    %30 = vector.extract_strided_slice %19 {offsets = [1, 2, 0], sizes = [8, 8, 128], strides = [1, 1, 1]} : vector<10x10x128xf32> to vector<8x8x128xf32>
    %31 = vector.shape_cast %30 : vector<8x8x128xf32> to vector<64x128xf32>
    %32 = vector.extract_strided_slice %19 {offsets = [2, 0, 0], sizes = [8, 8, 128], strides = [1, 1, 1]} : vector<10x10x128xf32> to vector<8x8x128xf32>
    %33 = vector.shape_cast %32 : vector<8x8x128xf32> to vector<64x128xf32>
    %34 = vector.extract_strided_slice %19 {offsets = [2, 1, 0], sizes = [8, 8, 128], strides = [1, 1, 1]} : vector<10x10x128xf32> to vector<8x8x128xf32>
    %35 = vector.shape_cast %34 : vector<8x8x128xf32> to vector<64x128xf32>
    %36 = vector.extract_strided_slice %19 {offsets = [2, 2, 0], sizes = [8, 8, 128], strides = [1, 1, 1]} : vector<10x10x128xf32> to vector<8x8x128xf32>
    %37 = vector.shape_cast %36 : vector<8x8x128xf32> to vector<64x128xf32>
    %38 = tpu.concatenate %21, %23, %25, %27, %29, %31, %33, %35, %37 in 1 : vector<64x128xf32>, vector<64x128xf32>, vector<64x128xf32>, vector<64x128xf32>, vector<64x128xf32>, vector<64x128xf32>, vector<64x128xf32>, vector<64x128xf32>, vector<64x128xf32> -> vector<64x1152xf32>
    %c0_11 = arith.constant 0 : index
    %c0_12 = arith.constant 0 : index
    %39 = vector.load %arg7[%c0_11, %c0_12] : memref<1152x128xf32, #tpu.memory_space<vmem>>, vector<1152x128xf32>
    %cst_13 = arith.constant dense<0.000000e+00> : vector<64x128xf32>
    %40 = tpu.matmul %38, %39, %cst_13 {dimension_numbers = #tpu.dot_dimension_numbers<[1], [0], [0], [1], [0, 0, 1, 1], [], []>} : vector<64x1152xf32>, vector<1152x128xf32>, vector<64x128xf32> -> vector<64x128xf32>
    %c0_14 = arith.constant 0 : index
    %c0_15 = arith.constant 0 : index
    %41 = vector.load %arg8[%c0_14, %c0_15] : memref<1x128xf32, #tpu.memory_space<vmem>>, vector<1x128xf32>
    %42 = vector.broadcast %41 : vector<1x128xf32> to vector<64x128xf32>
    %43 = arith.mulf %40, %42 : vector<64x128xf32>
    %c0_16 = arith.constant 0 : index
    %c0_17 = arith.constant 0 : index
    %44 = vector.load %arg9[%c0_16, %c0_17] : memref<1x128xf32, #tpu.memory_space<vmem>>, vector<1x128xf32>
    %45 = vector.broadcast %44 : vector<1x128xf32> to vector<64x128xf32>
    %46 = arith.addf %43, %45 : vector<64x128xf32>
    %cst_18 = arith.constant 0.000000e+00 : f32
    %47 = vector.broadcast %cst_18 : f32 to vector<64x128xf32>
    %48 = arith.maximumf %46, %47 : vector<64x128xf32>
    %c0_19 = arith.constant 0 : index
    %c0_20 = arith.constant 0 : index
    %49 = vector.load %arg10[%c0_19, %c0_20] : memref<128x128xf32, #tpu.memory_space<vmem>>, vector<128x128xf32>
    %cst_21 = arith.constant dense<0.000000e+00> : vector<64x128xf32>
    %50 = tpu.matmul %48, %49, %cst_21 {dimension_numbers = #tpu.dot_dimension_numbers<[1], [0], [0], [1], [0, 0, 1, 1], [], []>} : vector<64x128xf32>, vector<128x128xf32>, vector<64x128xf32> -> vector<64x128xf32>
    %c0_22 = arith.constant 0 : index
    %c0_23 = arith.constant 0 : index
    %51 = vector.load %arg11[%c0_22, %c0_23] : memref<1x128xf32, #tpu.memory_space<vmem>>, vector<1x128xf32>
    %52 = vector.broadcast %51 : vector<1x128xf32> to vector<64x128xf32>
    %53 = arith.mulf %50, %52 : vector<64x128xf32>
    %c0_24 = arith.constant 0 : index
    %c0_25 = arith.constant 0 : index
    %54 = vector.load %arg12[%c0_24, %c0_25] : memref<1x128xf32, #tpu.memory_space<vmem>>, vector<1x128xf32>
    %55 = vector.broadcast %54 : vector<1x128xf32> to vector<64x128xf32>
    %56 = arith.addf %53, %55 : vector<64x128xf32>
    %57 = vector.shape_cast %56 : vector<64x128xf32> to vector<1x8x8x128xf32>
    %c0_26 = arith.constant 0 : index
    %c0_27 = arith.constant 0 : index
    %c0_28 = arith.constant 0 : index
    %c0_29 = arith.constant 0 : index
    %58 = vector.load %arg13[%c0_26, %c0_27, %c0_28, %c0_29] : memref<1x8x8x128xf32, #tpu.memory_space<vmem>>, vector<1x8x8x128xf32>
    tpu.vector_store %arg13[%c0_26, %c0_27, %c0_28, %c0_29], %57 {strides = array<i32>} : memref<1x8x8x128xf32, #tpu.memory_space<vmem>>, vector<1x8x8x128xf32>,
    %c0_i32 = arith.constant 0 : i32
    %59 = arith.cmpi eq, %arg1, %c0_i32 : i32
    %60 = arith.extui %59 : i1 to i32
    %c0_i32_30 = arith.constant 0 : i32
    %61 = arith.cmpi ne, %60, %c0_i32_30 : i32
    scf.if %61 {
      %cst_38 = arith.constant 0.000000e+00 : f32
      %67 = vector.broadcast %cst_38 : f32 to vector<1x1x128xf32>
      %c0_39 = arith.constant 0 : index
      %c0_40 = arith.constant 0 : index
      %c0_41 = arith.constant 0 : index
      %68 = vector.load %arg14[%c0_39, %c0_40, %c0_41] : memref<1x1x128xf32, #tpu.memory_space<vmem>>, vector<1x1x128xf32>
      tpu.vector_store %arg14[%c0_39, %c0_40, %c0_41], %67 {strides = array<i32>} : memref<1x1x128xf32, #tpu.memory_space<vmem>>, vector<1x1x128xf32>,
    } else {
    }
    %c0_31 = arith.constant 0 : index
    %c0_32 = arith.constant 0 : index
    %c0_33 = arith.constant 0 : index
    %62 = vector.load %arg14[%c0_31, %c0_32, %c0_33] : memref<1x1x128xf32, #tpu.memory_space<vmem>>, vector<1x1x128xf32>
    %cst_34 = arith.constant dense<0.000000e+00> : vector<128xf32>
    %63 = vector.multi_reduction <add>, %56, %cst_34 [0] : vector<64x128xf32> to vector<128xf32>
    %64 = vector.shape_cast %63 : vector<128xf32> to vector<1x1x128xf32>
    %65 = arith.addf %62, %64 : vector<1x1x128xf32>
    %c0_35 = arith.constant 0 : index
    %c0_36 = arith.constant 0 : index
    %c0_37 = arith.constant 0 : index
    %66 = vector.load %arg14[%c0_35, %c0_36, %c0_37] : memref<1x1x128xf32, #tpu.memory_space<vmem>>, vector<1x1x128xf32>
    tpu.vector_store %arg14[%c0_35, %c0_36, %c0_37], %65 {strides = array<i32>} : memref<1x1x128xf32, #tpu.memory_space<vmem>>, vector<1x1x128xf32>,
    return
  }
  func.func @transform_0(%arg0: i32, %arg1: i32) -> (i32, i32, i32, i32) {
    %c0_i32 = arith.constant 0 : i32
    %c0_i32_0 = arith.constant 0 : i32
    %c0_i32_1 = arith.constant 0 : i32
    %c0_i32_2 = arith.constant 0 : i32
    return %arg0, %c0_i32, %c0_i32_0, %c0_i32_1 : i32, i32, i32, i32
  }
  func.func @transform_1(%arg0: i32, %arg1: i32) -> (i32, i32, i32) {
    %c0_i32 = arith.constant 0 : i32
    %c0_i32_0 = arith.constant 0 : i32
    %c0_i32_1 = arith.constant 0 : i32
    %c0_i32_2 = arith.constant 0 : i32
    return %c0_i32, %c0_i32_0, %c0_i32_1 : i32, i32, i32
  }
  func.func @transform_2(%arg0: i32, %arg1: i32) -> (i32, i32) {
    %c0_i32 = arith.constant 0 : i32
    %c0_i32_0 = arith.constant 0 : i32
    %c0_i32_1 = arith.constant 0 : i32
    return %c0_i32, %c0_i32_0 : i32, i32
  }
  func.func @transform_3(%arg0: i32, %arg1: i32) -> (i32, i32) {
    %c0_i32 = arith.constant 0 : i32
    %c0_i32_0 = arith.constant 0 : i32
    %c0_i32_1 = arith.constant 0 : i32
    return %c0_i32, %c0_i32_0 : i32, i32
  }
  func.func @transform_4(%arg0: i32, %arg1: i32) -> (i32, i32) {
    %c0_i32 = arith.constant 0 : i32
    %c0_i32_0 = arith.constant 0 : i32
    %c0_i32_1 = arith.constant 0 : i32
    return %c0_i32, %c0_i32_0 : i32, i32
  }
  func.func @transform_5(%arg0: i32, %arg1: i32) -> (i32, i32) {
    %c0_i32 = arith.constant 0 : i32
    %c0_i32_0 = arith.constant 0 : i32
    %c0_i32_1 = arith.constant 0 : i32
    return %c0_i32, %c0_i32_0 : i32, i32
  }
  func.func @transform_6(%arg0: i32, %arg1: i32) -> (i32, i32) {
    %c0_i32 = arith.constant 0 : i32
    %c0_i32_0 = arith.constant 0 : i32
    %c0_i32_1 = arith.constant 0 : i32
    return %c0_i32, %c0_i32_0 : i32, i32
  }
  func.func @transform_7(%arg0: i32, %arg1: i32) -> (i32, i32) {
    %c0_i32 = arith.constant 0 : i32
    %c0_i32_0 = arith.constant 0 : i32
    %c0_i32_1 = arith.constant 0 : i32
    return %c0_i32, %c0_i32_0 : i32, i32
  }
  func.func @transform_8(%arg0: i32, %arg1: i32) -> (i32, i32) {
    %c0_i32 = arith.constant 0 : i32
    %c0_i32_0 = arith.constant 0 : i32
    %c0_i32_1 = arith.constant 0 : i32
    return %c0_i32, %c0_i32_0 : i32, i32
  }
  func.func @transform_9(%arg0: i32, %arg1: i32) -> (i32, i32) {
    %c0_i32 = arith.constant 0 : i32
    %c0_i32_0 = arith.constant 0 : i32
    %c0_i32_1 = arith.constant 0 : i32
    return %c0_i32, %c0_i32_0 : i32, i32
  }
  func.func @transform_10(%arg0: i32, %arg1: i32) -> (i32, i32) {
    %c0_i32 = arith.constant 0 : i32
    %c0_i32_0 = arith.constant 0 : i32
    %c0_i32_1 = arith.constant 0 : i32
    return %c0_i32, %c0_i32_0 : i32, i32
  }
  func.func @transform_11(%arg0: i32, %arg1: i32) -> (i32, i32, i32, i32) {
    %c0_i32 = arith.constant 0 : i32
    %c0_i32_0 = arith.constant 0 : i32
    %c0_i32_1 = arith.constant 0 : i32
    return %arg0, %arg1, %c0_i32, %c0_i32_0 : i32, i32, i32, i32
  }
  func.func @transform_12(%arg0: i32, %arg1: i32) -> (i32, i32, i32) {
    %c0_i32 = arith.constant 0 : i32
    %c0_i32_0 = arith.constant 0 : i32
    %c0_i32_1 = arith.constant 0 : i32
    return %arg0, %c0_i32, %c0_i32_0 : i32, i32, i32
  }
}

module attributes {stable_mosaic.version = 11 : i64} {
  func.func @se_excite_res_relu_kernel(%arg0: i32, %arg1: i32, %arg2: memref<1x1x128xf32, #tpu.memory_space<vmem>>, %arg3: memref<128x128xf32, #tpu.memory_space<vmem>>, %arg4: memref<128x128xf32, #tpu.memory_space<vmem>>, %arg5: memref<1x8x8x128xf32, #tpu.memory_space<vmem>>, %arg6: memref<1x8x8x128xf32, #tpu.memory_space<vmem>>, %arg7: memref<1x8x8x128xf32, #tpu.memory_space<vmem>>) attributes {dimension_semantics = [#tpu.dimension_semantics<parallel>, #tpu.dimension_semantics<parallel>], iteration_bounds = array<i64: 2, 1>, scalar_prefetch = 0 : i64, scratch_operands = 0 : i64, tpu.core_type = #tpu.core_type<tc>, window_params = [{transform_indices = @transform_0, window_bounds = array<i64: 1, 1, 128>}, {pipeline_mode = #tpu.pipeline_mode<synchronous>, transform_indices = @transform_1, window_bounds = array<i64: 128, 128>}, {pipeline_mode = #tpu.pipeline_mode<synchronous>, transform_indices = @transform_2, window_bounds = array<i64: 128, 128>}, {transform_indices = @transform_3, window_bounds = array<i64: 1, 8, 8, 128>}, {transform_indices = @transform_4, window_bounds = array<i64: 1, 8, 8, 128>}, {transform_indices = @transform_5, window_bounds = array<i64: 1, 8, 8, 128>}]} {
    %c0 = arith.constant 0 : index
    %c0_0 = arith.constant 0 : index
    %c0_1 = arith.constant 0 : index
    %0 = vector.load %arg2[%c0, %c0_0, %c0_1] : memref<1x1x128xf32, #tpu.memory_space<vmem>>, vector<1x1x128xf32>
    %1 = vector.shape_cast %0 : vector<1x1x128xf32> to vector<1x128xf32>
    %cst = arith.constant 1.562500e-02 : f32
    %2 = vector.broadcast %cst : f32 to vector<1x128xf32>
    %3 = arith.mulf %1, %2 : vector<1x128xf32>
    %c0_2 = arith.constant 0 : index
    %c0_3 = arith.constant 0 : index
    %4 = vector.load %arg3[%c0_2, %c0_3] : memref<128x128xf32, #tpu.memory_space<vmem>>, vector<128x128xf32>
    %cst_4 = arith.constant dense<0.000000e+00> : vector<1x128xf32>
    %5 = tpu.matmul %3, %4, %cst_4 {dimension_numbers = #tpu.dot_dimension_numbers<[1], [0], [0], [1], [0, 0, 1, 1], [], []>} : vector<1x128xf32>, vector<128x128xf32>, vector<1x128xf32> -> vector<1x128xf32>
    %cst_5 = arith.constant 0.000000e+00 : f32
    %6 = vector.broadcast %cst_5 : f32 to vector<1x128xf32>
    %7 = arith.maximumf %5, %6 : vector<1x128xf32>
    %c0_6 = arith.constant 0 : index
    %c0_7 = arith.constant 0 : index
    %8 = vector.load %arg4[%c0_6, %c0_7] : memref<128x128xf32, #tpu.memory_space<vmem>>, vector<128x128xf32>
    %cst_8 = arith.constant dense<0.000000e+00> : vector<1x128xf32>
    %9 = tpu.matmul %7, %8, %cst_8 {dimension_numbers = #tpu.dot_dimension_numbers<[1], [0], [0], [1], [0, 0, 1, 1], [], []>} : vector<1x128xf32>, vector<128x128xf32>, vector<1x128xf32> -> vector<1x128xf32>
    %10 = arith.negf %9 : vector<1x128xf32>
    %11 = math.exp %10 : vector<1x128xf32>
    %cst_9 = arith.constant 1.000000e+00 : f32
    %12 = vector.broadcast %cst_9 : f32 to vector<1x128xf32>
    %13 = arith.addf %12, %11 : vector<1x128xf32>
    %14 = arith.divf %12, %13 : vector<1x128xf32>
    %15 = vector.shape_cast %14 : vector<1x128xf32> to vector<1x1x1x128xf32>
    %c0_10 = arith.constant 0 : index
    %c0_11 = arith.constant 0 : index
    %c0_12 = arith.constant 0 : index
    %c0_13 = arith.constant 0 : index
    %16 = vector.load %arg5[%c0_10, %c0_11, %c0_12, %c0_13] : memref<1x8x8x128xf32, #tpu.memory_space<vmem>>, vector<1x8x8x128xf32>
    %17 = vector.broadcast %15 : vector<1x1x1x128xf32> to vector<1x8x8x128xf32>
    %18 = arith.mulf %16, %17 : vector<1x8x8x128xf32>
    %c0_14 = arith.constant 0 : index
    %c0_15 = arith.constant 0 : index
    %c0_16 = arith.constant 0 : index
    %c0_17 = arith.constant 0 : index
    %19 = vector.load %arg6[%c0_14, %c0_15, %c0_16, %c0_17] : memref<1x8x8x128xf32, #tpu.memory_space<vmem>>, vector<1x8x8x128xf32>
    %20 = arith.addf %18, %19 : vector<1x8x8x128xf32>
    %cst_18 = arith.constant 0.000000e+00 : f32
    %21 = vector.broadcast %cst_18 : f32 to vector<1x8x8x128xf32>
    %22 = arith.maximumf %20, %21 : vector<1x8x8x128xf32>
    %c0_19 = arith.constant 0 : index
    %c0_20 = arith.constant 0 : index
    %c0_21 = arith.constant 0 : index
    %c0_22 = arith.constant 0 : index
    %23 = vector.load %arg7[%c0_19, %c0_20, %c0_21, %c0_22] : memref<1x8x8x128xf32, #tpu.memory_space<vmem>>, vector<1x8x8x128xf32>
    tpu.vector_store %arg7[%c0_19, %c0_20, %c0_21, %c0_22], %22 {strides = array<i32>} : memref<1x8x8x128xf32, #tpu.memory_space<vmem>>, vector<1x8x8x128xf32>,
    return
  }
  func.func @transform_0(%arg0: i32, %arg1: i32) -> (i32, i32, i32) {
    %c0_i32 = arith.constant 0 : i32
    %c0_i32_0 = arith.constant 0 : i32
    %c0_i32_1 = arith.constant 0 : i32
    return %arg0, %c0_i32, %c0_i32_0 : i32, i32, i32
  }
  func.func @transform_1(%arg0: i32, %arg1: i32) -> (i32, i32) {
    %c0_i32 = arith.constant 0 : i32
    %c0_i32_0 = arith.constant 0 : i32
    %c0_i32_1 = arith.constant 0 : i32
    return %c0_i32, %c0_i32_0 : i32, i32
  }
  func.func @transform_2(%arg0: i32, %arg1: i32) -> (i32, i32) {
    %c0_i32 = arith.constant 0 : i32
    %c0_i32_0 = arith.constant 0 : i32
    %c0_i32_1 = arith.constant 0 : i32
    return %c0_i32, %c0_i32_0 : i32, i32
  }
  func.func @transform_3(%arg0: i32, %arg1: i32) -> (i32, i32, i32, i32) {
    %c0_i32 = arith.constant 0 : i32
    %c0_i32_0 = arith.constant 0 : i32
    %c0_i32_1 = arith.constant 0 : i32
    return %arg0, %arg1, %c0_i32, %c0_i32_0 : i32, i32, i32, i32
  }
  func.func @transform_4(%arg0: i32, %arg1: i32) -> (i32, i32, i32, i32) {
    %c0_i32 = arith.constant 0 : i32
    %c0_i32_0 = arith.constant 0 : i32
    %c0_i32_1 = arith.constant 0 : i32
    return %arg0, %arg1, %c0_i32, %c0_i32_0 : i32, i32, i32, i32
  }
  func.func @transform_5(%arg0: i32, %arg1: i32) -> (i32, i32, i32, i32) {
    %c0_i32 = arith.constant 0 : i32
    %c0_i32_0 = arith.constant 0 : i32
    %c0_i32_1 = arith.constant 0 : i32
    return %arg0, %arg1, %c0_i32, %c0_i32_0 : i32, i32, i32, i32
  }
}

</mosaic_0001>

<bundles_post_ra>
// kernel: se_bottleneck_forward.3
= control target key start
LH: loop header
LB: loop body
LE: loop exit
PB: predicated region body
PF: predicated region fallthrough
CT: control target
= control target key end

     0   :  { %s868_s18 = smov 0   ;;  %s870_s19 = smov 0   ;;  %s1050_s0 = inlined_call_operand.vmem [shape: f32[2,1,128], index: 0, kind: input, shape index: {}]   ;;  %s1051_s1 = inlined_call_operand.vmem [shape: f32[128,128], index: 1, kind: input, shape index: {}]   ;;  %s1052_s2 = inlined_call_operand.vmem [shape: f32[128,128], index: 2, kind: input, shape index: {}]   ;;  %s1053_s3 = inlined_call_operand.vmem [shape: f32[2,8,8,128], index: 3, kind: input, shape index: {}]   ;;  %s1054_s4 = inlined_call_operand.vmem [shape: f32[2,8,8,128], index: 4, kind: input, shape index: {}]   ;;  %s1055_s5 = inlined_call_operand.vmem [shape: f32[2,8,8,128], index: 5, kind: output, shape index: {}]  }
   0x1   :  { %s872_s20 = smov 0  }
   0x2 LB: > { %s27_s21 = sadd.s32 1, %s830_s19  ;;  %p665_p0 = scmp.ge.s32.totalorder %s834_s20, 1  ;;  %s834_s20 = sphi %s872_s20, %s15_s20   ;;  %s830_s19 = sphi %s870_s19, %s1057_s19   ;;  %s826_s18 = sphi %s868_s18, %s1056_s18  }
   0x3   : > { %p29_p1 = scmp.ge.s32.totalorder %s27_s21, 2  ;;  %p233_p2 = scmp.lt.s32.totalorder %s834_s20, 3 }
   0x5   : > { %s1059_s21 = smov (%p29_p1, %s27_s21), 0  ;;  %p234_p3 = pnand %p665_p0, %p233_p2 }
   0x6   : > { %p281_p4 = scmp.lt.s32.totalorder (!%p234_p3), %s826_s18, 1 }
   0x7   : > { %237 = sbr.rel (%p234_p3) target bundleno = 477 (0x1dd), region = 40 }
   0xc   : > { %v331_v0 = vld [vmem:[%s1051_s1 + $0x78] sm:$0xff]  ;;  %v836_v1 = vmov 0.0   ;;  %v330_v2 = vld [vmem:[%s1051_s1 + $0x70] sm:$0xff]  ;;  %vm837_vm0 = vmmov 0   ;;  %v329_v3 = vld [vmem:[%s1051_s1 + $0x68] sm:$0xff]  ;;  %s1061_s18 = smov (!%p281_p4, %s826_s18), 1  ;;  %v503_v43 = vlaneseq }
   0xd   : > { %712 = vmatprep.subr.mxu0 %v836_v1  ;;  %744 = vmatprep.mubr.msk.f32.mxu0 %vm837_vm0, %v836_v1  ;;  %v328_v4 = vld [vmem:[%s1051_s1 + $0x60] sm:$0xff]  ;;  %v418_v5 = vld [vmem:[%s1052_s2 + $0x78] sm:$0xff]  ;;  %v326_v7 = vld [vmem:[%s1051_s1 + $0x50] sm:$0xff]  ;;  %s283_s24 = scalar_lea.vmem %s1050_s0, %s1061_s18  ;;  %s1027_s26 = sshll.u32 %s1061_s18, 6 }
   0xe   : > { %713 = vmatpush3.msra.mxu0 %v331_v0  ;;  %747 = vmatprep.subr.mxu1 %v836_v1  ;;  %v327_v6 = vld [vmem:[%s1051_s1 + $0x58] sm:$0xff]  ;;  %v325_v8 = vld [vmem:[%s1051_s1 + $0x48] sm:$0xff]  ;;  %v417_v9 = vld [vmem:[%s1052_s2 + $0x70] sm:$0xff]  ;;  %v504_v44 = vshrl.u32 %v503_v43, 7  ;;  %s292_s29 = scalar_lea.vmem %s1053_s3, %s1027_s26  ;;  %s302_s7 = scalar_lea.vmem %s1054_s4, %s1027_s26 }
   0xf   : > { %714 = vmatprep.subr.mxu0 %v836_v1  ;;  %779 = vmatprep.mubr.msk.f32.mxu1 %vm837_vm0, %v836_v1  ;;  %v416_v10 = vld [vmem:[%s1052_s2 + $0x68] sm:$0xff]  ;;  %v324_v11 = vld [vmem:[%s1051_s1 + $0x40] sm:$0xff]  ;;  %v323_v13 = vld [vmem:[%s1051_s1 + $0x38] sm:$0xff]  ;;  %s312_s9 = scalar_lea.vmem %s1055_s5, %s1027_s26 }
  0x10   : > { %715 = vmatpush3.msra.mxu0 %v330_v2  ;;  %748 = vmatpush3.msra.mxu1 %v418_v5  ;;  %v415_v12 = vld [vmem:[%s1052_s2 + $0x60] sm:$0xff]  ;;  %v414_v14 = vld [vmem:[%s1052_s2 + $0x58] sm:$0xff]  ;;  %v322_v15 = vld [vmem:[%s1051_s1 + $0x30] sm:$0xff]  ;;  %v505_v45 = vsub.s32 0, %v504_v44 }
  0x11   : > { %716 = vmatprep.subr.mxu0 %v836_v1  ;;  %749 = vmatprep.subr.mxu1 %v836_v1  ;;  %v413_v16 = vld [vmem:[%s1052_s2 + $0x50] sm:$0xff]  ;;  %v321_v17 = vld [vmem:[%s1051_s1 + $0x28] sm:$0xff]  ;;  %v320_v19 = vld [vmem:[%s1051_s1 + $0x20] sm:$0xff] }
  0x12   : > { %717 = vmatpush3.msra.mxu0 %v329_v3  ;;  %750 = vmatpush3.msra.mxu1 %v417_v9  ;;  %v412_v18 = vld [vmem:[%s1052_s2 + $0x48] sm:$0xff]  ;;  %v411_v20 = vld [vmem:[%s1052_s2 + $0x40] sm:$0xff]  ;;  %v319_v21 = vld [vmem:[%s1051_s1 + $0x18] sm:$0xff] }
  0x13   : > { %718 = vmatprep.subr.mxu0 %v836_v1  ;;  %751 = vmatprep.subr.mxu1 %v836_v1  ;;  %v410_v22 = vld [vmem:[%s1052_s2 + $0x38] sm:$0xff]  ;;  %v318_v23 = vld [vmem:[%s1051_s1 + $0x10] sm:$0xff]  ;;  %v314_v25 = vld [vmem:[%s283_s24] sm:$0x1] }
  0x14   : > { %719 = vmatpush3.msra.mxu0 %v328_v4  ;;  %752 = vmatpush3.msra.mxu1 %v416_v10  ;;  %v409_v24 = vld [vmem:[%s1052_s2 + $0x30] sm:$0xff]  ;;  %v317_v26 = vld [vmem:[%s1051_s1 + $0x8] sm:$0xff]  ;;  %v316_v28 = vld [vmem:[%s1051_s1] sm:$0xff]  ;;  %v315_v29 = vmul.f32 0.015625, %v314_v25 }
  0x15   : > { %720 = vmatprep.subr.mxu0 %v836_v1  ;;  %753 = vmatprep.subr.mxu1 %v836_v1  ;;  %v408_v27 = vld [vmem:[%s1052_s2 + $0x28] sm:$0xff]  ;;  %v407_v30 = vld [vmem:[%s1052_s2 + $0x20] sm:$0xff]  ;;  %v406_v31 = vld [vmem:[%s1052_s2 + $0x18] sm:$0xff] }
  0x16   : > { %721 = vmatpush3.msra.mxu0 %v327_v6  ;;  %754 = vmatpush3.msra.mxu1 %v415_v12  ;;  %v405_v32 = vld [vmem:[%s1052_s2 + $0x10] sm:$0xff]  ;;  %v404_v33 = vld [vmem:[%s1052_s2 + $0x8] sm:$0xff]  ;;  %v403_v34 = vld [vmem:[%s1052_s2] sm:$0xff] }
  0x17   : > { %722 = vmatprep.subr.mxu0 %v836_v1  ;;  %755 = vmatprep.subr.mxu1 %v836_v1  ;;  %v495_v46 = vld [vmem:[%s292_s29] sm:$0xff]  ;;  %v496_v47 = vld [vmem:[%s292_s29 + $0x8] sm:$0xff]  ;;  %v497_v48 = vld [vmem:[%s292_s29 + $0x10] sm:$0xff] }
  0x18   : > { %723 = vmatpush3.msra.mxu0 %v326_v7  ;;  %756 = vmatpush3.msra.mxu1 %v414_v14  ;;  %v498_v49 = vld [vmem:[%s292_s29 + $0x18] sm:$0xff]  ;;  %v499_v51 = vld [vmem:[%s292_s29 + $0x20] sm:$0xff]  ;;  %v500_v52 = vld [vmem:[%s292_s29 + $0x28] sm:$0xff] }
  0x19   : > { %724 = vmatprep.subr.mxu0 %v836_v1  ;;  %757 = vmatprep.subr.mxu1 %v836_v1  ;;  %v501_v53 = vld [vmem:[%s292_s29 + $0x30] sm:$0xff]  ;;  %v502_v54 = vld [vmem:[%s292_s29 + $0x38] sm:$0xff]  ;;  %v515_v55 = vld [vmem:[%s302_s7] sm:$0xff] }
  0x1a   : > { %725 = vmatpush3.msra.mxu0 %v325_v8  ;;  %758 = vmatpush3.msra.mxu1 %v413_v16  ;;  %v516_v56 = vld [vmem:[%s302_s7 + $0x8] sm:$0xff]  ;;  %v517_v58 = vld [vmem:[%s302_s7 + $0x10] sm:$0xff]  ;;  %v518_v59 = vld [vmem:[%s302_s7 + $0x18] sm:$0xff] }
  0x1b   : > { %726 = vmatprep.subr.mxu0 %v836_v1  ;;  %759 = vmatprep.subr.mxu1 %v836_v1  ;;  %v519_v60 = vld [vmem:[%s302_s7 + $0x20] sm:$0xff]  ;;  %v520_v61 = vld [vmem:[%s302_s7 + $0x28] sm:$0xff]  ;;  %v521_v62 = vld [vmem:[%s302_s7 + $0x30] sm:$0xff] }
  0x1c   : > { %727 = vmatpush3.msra.mxu0 %v324_v11  ;;  %760 = vmatpush3.msra.mxu1 %v412_v18  ;;  %v522_v63 = vld [vmem:[%s302_s7 + $0x38] sm:$0xff] }
  0x1d   : > { %728 = vmatprep.subr.mxu0 %v836_v1  ;;  %761 = vmatprep.subr.mxu1 %v836_v1 }
  0x1e   : > { %729 = vmatpush3.msra.mxu0 %v323_v13  ;;  %762 = vmatpush3.msra.mxu1 %v411_v20 }
  0x1f   : > { %730 = vmatprep.subr.mxu0 %v836_v1  ;;  %763 = vmatprep.subr.mxu1 %v836_v1 }
  0x20   : > { %731 = vmatpush3.msra.mxu0 %v322_v15  ;;  %764 = vmatpush3.msra.mxu1 %v410_v22 }
  0x21   : > { %732 = vmatprep.subr.mxu0 %v836_v1  ;;  %765 = vmatprep.subr.mxu1 %v836_v1 }
  0x22   : > { %733 = vmatpush3.msra.mxu0 %v321_v17  ;;  %766 = vmatpush3.msra.mxu1 %v409_v24 }
  0x23   : > { %734 = vmatprep.subr.mxu0 %v836_v1  ;;  %767 = vmatprep.subr.mxu1 %v836_v1 }
  0x24   : > { %735 = vmatpush3.msra.mxu0 %v320_v19  ;;  %768 = vmatpush3.msra.mxu1 %v408_v27 }
  0x25   : > { %736 = vmatprep.subr.mxu0 %v836_v1  ;;  %769 = vmatprep.subr.mxu1 %v836_v1 }
  0x26   : > { %737 = vmatpush3.msra.mxu0 %v319_v21  ;;  %770 = vmatpush3.msra.mxu1 %v407_v30 }
  0x27   : > { %738 = vmatprep.subr.mxu0 %v836_v1  ;;  %771 = vmatprep.subr.mxu1 %v836_v1 }
  0x28   : > { %739 = vmatpush3.msra.mxu0 %v318_v23  ;;  %772 = vmatpush3.msra.mxu1 %v406_v31 }
  0x29   : > { %740 = vmatprep.subr.mxu0 %v836_v1  ;;  %773 = vmatprep.subr.mxu1 %v836_v1 }
  0x2a   : > { %741 = vmatpush3.msra.mxu0 %v317_v26  ;;  %774 = vmatpush3.msra.mxu1 %v405_v32 }
  0x2b   : > { %742 = vmatprep.subr.mxu0 %v836_v1  ;;  %775 = vmatprep.subr.mxu1 %v836_v1 }
  0x2c   : > { %743 = vmatpush3.msra.mxu0 %v316_v28  ;;  %776 = vmatpush3.msra.mxu1 %v404_v33 }
  0x2d   : > { %745 = vmatmul.mubr.f32.vlgmr.msra.gmra.mxu0 %v315_v29  ;;  %777 = vmatprep.subr.mxu1 %v836_v1 }
  0x2e   : > { %778 = vmatpush3.msra.mxu1 %v403_v34 }
  0xed   : > { %v398_v35 = vpop.f32.mrf.mxu0 }
  0xee   : > { %v402_v36 = vmax.f32 %v398_v35, 0.0 }
  0xef   : > { %v746_v37 = vpop.f32.mrf.mxu0 }
  0xf0   : > { %780 = vmatmul.mubr.f32.vlgmr.msra.gmra.mxu1 %v402_v36 }
 0x1b0   : > { %v485_v38 = vpop.f32.mrf.mxu1 }
 0x1b1   : > { %v672_v39 = vmul.f32 -1.442695, %v485_v38 }
 0x1b2   : > { %v781_v40 = vpop.f32.mrf.mxu1 }
 0x1b3   : > { %808 = vpow2.f32 %v672_v39 }
 0x1c0   : > { %v809_v41 = vpop.eup %808 }
 0x1c1   : > { %v492_v42 = vadd.f32 1.0, %v809_v41 }
 0x1c3   : > { %810 = vrcp.f32 %v492_v42 }
 0x1d0   : > { %v811_v50 = vpop.eup %810 }
 0x1d1   : > { %v506_v57 = vrot.slane %v811_v50, %v505_v45 }
 0x1d3   : > { %v507_v0 = vmul.f32 %v506_v57, %v495_v46  ;;  %v508_v1 = vmul.f32 %v506_v57, %v496_v47  ;;  %v509_v2 = vmul.f32 %v506_v57, %v497_v48  ;;  %v510_v3 = vmul.f32 %v506_v57, %v498_v49 }
 0x1d4   : > { %v511_v4 = vmul.f32 %v506_v57, %v499_v51  ;;  %v512_v5 = vmul.f32 %v506_v57, %v500_v52  ;;  %v513_v6 = vmul.f32 %v506_v57, %v501_v53  ;;  %v514_v7 = vmul.f32 %v506_v57, %v502_v54 }
 0x1d5   : > { %v523_v8 = vadd.f32 %v515_v55, %v507_v0  ;;  %v524_v9 = vadd.f32 %v516_v56, %v508_v1  ;;  %v525_v10 = vadd.f32 %v517_v58, %v509_v2  ;;  %v526_v11 = vadd.f32 %v518_v59, %v510_v3 }
 0x1d6   : > { %v527_v12 = vadd.f32 %v519_v60, %v511_v4  ;;  %v528_v13 = vadd.f32 %v520_v61, %v512_v5  ;;  %v529_v14 = vadd.f32 %v521_v62, %v513_v6  ;;  %v530_v15 = vadd.f32 %v522_v63, %v514_v7 }
 0x1d7   : > { %v531_v16 = vmax.f32 %v523_v8, 0.0  ;;  %v532_v17 = vmax.f32 %v524_v9, 0.0  ;;  %v533_v18 = vmax.f32 %v525_v10, 0.0  ;;  %v534_v19 = vmax.f32 %v526_v11, 0.0 }
 0x1d8   : > { %v535_v20 = vmax.f32 %v527_v12, 0.0  ;;  %v536_v21 = vmax.f32 %v528_v13, 0.0  ;;  %v537_v22 = vmax.f32 %v529_v14, 0.0  ;;  %v538_v23 = vmax.f32 %v530_v15, 0.0 }
 0x1d9   : > { %539 = vst [vmem:[%s312_s9] sm:$0xff] %v531_v16  ;;  %540 = vst [vmem:[%s312_s9 + $0x8] sm:$0xff] %v532_v17 }
 0x1da   : > { %541 = vst [vmem:[%s312_s9 + $0x10] sm:$0xff] %v533_v18  ;;  %542 = vst [vmem:[%s312_s9 + $0x18] sm:$0xff] %v534_v19 }
 0x1db   : > { %543 = vst [vmem:[%s312_s9 + $0x20] sm:$0xff] %v535_v20  ;;  %544 = vst [vmem:[%s312_s9 + $0x28] sm:$0xff] %v536_v21 }
 0x1dc   : > { %545 = vst [vmem:[%s312_s9 + $0x30] sm:$0xff] %v537_v22  ;;  %546 = vst [vmem:[%s312_s9 + $0x38] sm:$0xff] %v538_v23 }
 0x1dd PF: > { %s15_s20 = sadd.s32 1, %s834_s20   ;;  %s1056_s18 = smov %s830_s19 }
 0x1de   : > { %p12_p5 = scmp.ge.s32.totalorder %s15_s20, 4   ;;  %s1057_s19 = smov %s1059_s21 }
 0x1e0   :  { %14 = sbr.rel (!%p12_p5) target bundleno = 2 (0x2), region = 76 }

// kernel: se_bottleneck_forward.2
= control target key start
LH: loop header
LB: loop body
LE: loop exit
PB: predicated region body
PF: predicated region fallthrough
CT: control target
= control target key end

     0   :  { %s4342_s21 = smov 0   ;;  %s4344_s22 = smov 0   ;;  %s6193_s0 = inlined_call_operand.vmem [shape: f32[2,10,10,128], index: 0, kind: input, shape index: {}]   ;;  %s6194_s1 = inlined_call_operand.vmem [shape: f32[10,10,1], index: 1, kind: input, shape index: {}]   ;;  %s6195_s2 = inlined_call_operand.vmem [shape: f32[128,128], index: 2, kind: input, shape index: {}]   ;;  %s6196_s3 = inlined_call_operand.vmem [shape: f32[1,128], index: 3, kind: input, shape index: {}]   ;;  %s6197_s4 = inlined_call_operand.vmem [shape: f32[1,128], index: 4, kind: input, shape index: {}]   ;;  %s6198_s5 = inlined_call_operand.vmem [shape: f32[1152,128], index: 5, kind: input, shape index: {}]   ;;  %s6199_s6 = inlined_call_operand.vmem [shape: f32[1,128], index: 6, kind: input, shape index: {}]   ;;  %s6200_s7 = inlined_call_operand.vmem [shape: f32[1,128], index: 7, kind: input, shape index: {}]   ;;  %s6201_s8 = inlined_call_operand.vmem [shape: f32[128,128], index: 8, kind: input, shape index: {}]   ;;  %s6202_s9 = inlined_call_operand.vmem [shape: f32[1,128], index: 9, kind: input, shape index: {}]   ;;  %s6203_s10 = inlined_call_operand.vmem [shape: f32[1,128], index: 10, kind: input, shape index: {}]   ;;  %s6204_s11 = inlined_call_operand.vmem [shape: f32[2,8,8,128], index: 11, kind: output, shape index: {0}]   ;;  %s6205_s12 = inlined_call_operand.vmem [shape: f32[2,1,128], index: 12, kind: output, shape index: {1}]  }
   0x1   :  { %s4346_s23 = smov 0  }
   0x2 LB: > { %s35_s24 = sadd.s32 1, %s4263_s22  ;;  %p3707_p0 = scmp.ge.s32.totalorder %s4267_s23, 1  ;;  %s4267_s23 = sphi %s4346_s23, %s23_s23   ;;  %s4263_s22 = sphi %s4344_s22, %s6289_s22   ;;  %s4259_s21 = sphi %s4342_s21, %s6288_s21  }
   0x3   : > { %p37_p1 = scmp.ge.s32.totalorder %s35_s24, 2  ;;  %p379_p2 = scmp.lt.s32.totalorder %s4267_s23, 3 }
   0x5   : > { %s6291_s24 = smov (%p37_p1, %s35_s24), 0  ;;  %p380_p3 = pnand %p3707_p0, %p379_p2 }
   0x7   : > { %383 = sbr.rel (%p380_p3) target bundleno = 844 (0x34c), region = 64 }
   0xc   : > { %v744_v0 = vld [vmem:[%s6195_s2 + $0x78] sm:$0xff]  ;;  %p428_p4 = scmp.lt.s32.totalorder %s4259_s21, 1  ;;  %v6206_v1 = vmov 0.0   ;;  %v743_v2 = vld [vmem:[%s6195_s2 + $0x70] sm:$0xff]  ;;  %vm4270_vm0 = vmmov 0   ;;  %v493_v3 = vlaneseq  ;;  %v4272_v6 = vmov 0  }
   0xd   : > { %4041 = vmatprep.subr.mxu0 %v6206_v1  ;;  %4073 = vmatprep.mubr.msk.f32.mxu0 %vm4270_vm0, %v6206_v1  ;;  %v4271_v4 = vmov 1983009808   ;;  %v742_v7 = vld [vmem:[%s6195_s2 + $0x68] sm:$0xff]  ;;  %v741_v8 = vld [vmem:[%s6195_s2 + $0x60] sm:$0xff]  ;;  %v1431_v12 = vld [vmem:[%s6194_s1 + $0x10] sm:$0xff]  ;;  %vm2019_vm1 = vcmask 1040384  }
   0xe   : > { %4042 = vmatpush3.msra.mxu0 %v744_v0  ;;  %s6293_s21 = smov (!%p428_p4, %s4259_s21), 1  ;;  %v491_v5 = vunpack.c.l.s4 %v4271_v4  ;;  %4233 = vset.pattern.permute.xlu0 %v4272_v6  ;;  %v4380_v10 = vshrl.u32 %v493_v3, 7  ;;  %v1429_v11 = vld [vmem:[%s6194_s1] sm:$0xff]  ;;  %v740_v13 = vld [vmem:[%s6195_s2 + $0x58] sm:$0xff]  ;;  %v739_v15 = vld [vmem:[%s6195_s2 + $0x50] sm:$0xff]  ;;  %vm2020_vm2 = vcmask 1042434  }
   0xf   : > { %4043 = vmatprep.subr.mxu0 %v6206_v1  ;;  %4234 = vset.pattern.permute.xlu1 %v4272_v6  ;;  %s4200_s13 = smul.u32 160, %s6293_s21  ;;  %v738_v18 = vld [vmem:[%s6195_s2 + $0x48] sm:$0xff]  ;;  %v737_v19 = vld [vmem:[%s6195_s2 + $0x40] sm:$0xff]  ;;  %v736_v23 = vld [vmem:[%s6195_s2 + $0x38] sm:$0xff]  ;;  %vm2022_vm3 = vcmask 1044484   ;;  %vm2024_vm4 = vcmask 1046534   ;;  %s6158_s30 = scalar_lea.vmem %s6205_s12, %s6293_s21 }
  0x10   : > { %4044 = vmatpush3.msra.mxu0 %v743_v2  ;;  %v492_v9 = vunpack.c.0.s8 %v491_v5  ;;  %1451 = vperm.xlu0 %4233, %v1429_v11   ;;  %v735_v24 = vld [vmem:[%s6195_s2 + $0x30] sm:$0xff]  ;;  %v734_v30 = vld [vmem:[%s6195_s2 + $0x28] sm:$0xff]  ;;  %v733_v33 = vld [vmem:[%s6195_s2 + $0x20] sm:$0xff]  ;;  %s3739_s15 = sshll.u32 %s6293_s21, 6 }
  0x11   : > { %4045 = vmatprep.subr.mxu0 %v6206_v1  ;;  %s4391_s26 = scalar_lea.vmem %s6193_s0, %s4200_s13  ;;  %1459 = vperm.xlu1 %4234, %v1431_v12   ;;  %v732_v40 = vld [vmem:[%s6195_s2 + $0x18] sm:$0xff]  ;;  %v731_v45 = vld [vmem:[%s6195_s2 + $0x10] sm:$0xff]  ;;  %v730_v52 = vld [vmem:[%s6195_s2 + $0x8] sm:$0xff]  ;;  %s6172_s20 = scalar_lea.vmem %s6204_s11, %s3739_s15 }
  0x12   : > { %4046 = vmatpush3.msra.mxu0 %v742_v7  ;;  %v449_v14 = vld [vmem:[%s4391_s26] sm:$0xff]  ;;  %v4403_v17 = vsub.s32 %v492_v9, %v4380_v10  ;;  %v451_v22 = vld [vmem:[%s4391_s26 + $0x10] sm:$0xff]  ;;  %v3711_v39 = vld.sshfl [vmem:[%s4391_s26 + $0x8] sm:$0x3 pattern:$0x76325410] }
  0x13   : > { %4047 = vmatprep.subr.mxu0 %v6206_v1  ;;  %v489_v16 = vcombine.high %v449_v14, %v449_v14  ;;  %v513_v27 = vcombine.high %v451_v22, %v451_v22  ;;  %v453_v29 = vld [vmem:[%s4391_s26 + $0x20] sm:$0xff]  ;;  %v455_v38 = vld [vmem:[%s4391_s26 + $0x30] sm:$0xff]  ;;  %v3712_v50 = vld.sshfl [vmem:[%s4391_s26 + $0x18] sm:$0x3 pattern:$0x76325410] }
  0x14   : > { %4048 = vmatpush3.msra.mxu0 %v741_v8  ;;  %v496_v20 = vrot.slane %v449_v14, %v4403_v17  ;;  %v520_v28 = vrot.slane %v451_v22, %v4403_v17  ;;  %v537_v31 = vcombine.high %v453_v29, %v453_v29  ;;  %v544_v32 = vrot.slane %v453_v29, %v4403_v17  ;;  %v457_v51 = vld [vmem:[%s4391_s26 + $0x40] sm:$0xff]  ;;  %v3713_v57 = vld.sshfl [vmem:[%s4391_s26 + $0x28] sm:$0x3 pattern:$0x76325410]  ;;  %v459_v14 = vld [vmem:[%s4391_s26 + $0x50] sm:$0xff] }
  0x15   : > { %4049 = vmatprep.subr.mxu0 %v6206_v1  ;;  %v503_v21 = vrot.slane %v489_v16, %v4403_v17  ;;  %v527_v36 = vrot.slane %v513_v27, %v4403_v17  ;;  %v561_v44 = vcombine.high %v455_v38, %v455_v38  ;;  %v568_v54 = vrot.slane %v455_v38, %v4403_v17  ;;  %v1430_v59 = vld [vmem:[%s6194_s1 + $0x8] sm:$0x3]  ;;  %v729_v60 = vld [vmem:[%s6195_s2] sm:$0xff]  ;;  %v1432_v2 = vld [vmem:[%s6194_s1 + $0x18] sm:$0x3] }
  0x16   : > { %4050 = vmatpush3.msra.mxu0 %v740_v13  ;;  %v504_v25 = vcombine.high %v496_v20, %v496_v20  ;;  %v528_v37 = vcombine.high %v520_v28, %v520_v28  ;;  %v551_v41 = vrot.slane %v537_v31, %v4403_v17  ;;  %v552_v43 = vcombine.high %v544_v32, %v544_v32  ;;  %v1433_v11 = vld [vmem:[%s6194_s1 + $0x20] sm:$0xff]  ;;  %v1434_v16 = vld [vmem:[%s6194_s1 + $0x28] sm:$0x3]  ;;  %v1436_v29 = vld [vmem:[%s6194_s1 + $0x38] sm:$0x3] }
  0x17   : > { %4051 = vmatprep.subr.mxu0 %v6206_v1  ;;  %v505_v26 = vcombine.high %v503_v21, %v503_v21  ;;  %v529_v42 = vcombine.high %v527_v36, %v527_v36  ;;  %v762_v48 = vcombine.low %v3711_v39, %v520_v28  ;;  %v585_v58 = vcombine.high %v457_v51, %v457_v51  ;;  %v461_v28 = vld [vmem:[%s4391_s26 + $0x60] sm:$0xff]  ;;  %vm4936_vm5 = vmor %vm2019_vm1, %vm2020_vm2 }
  0x18   : > { %4052 = vmatpush3.msra.mxu0 %v739_v15  ;;  %v745_v34 = vcombine.low %v496_v20, %v504_v25  ;;  %v763_v49 = vcombine.low %v528_v37, %v527_v36  ;;  %v553_v53 = vcombine.high %v551_v41, %v551_v41  ;;  %v780_v56 = vcombine.low %v544_v32, %v552_v43  ;;  %v3714_v15 = vld.sshfl [vmem:[%s4391_s26 + $0x38] sm:$0x3 pattern:$0x76325410]  ;;  %v1437_v39 = vld [vmem:[%s6194_s1 + $0x40] sm:$0xff]  ;;  %vm4963_vm6 = vmor %vm4936_vm5, %vm2022_vm3 }
  0x19   : > { %4053 = vmatprep.subr.mxu0 %v6206_v1  ;;  %v746_v35 = vcombine.low %v503_v21, %v505_v26  ;;  %v779_v55 = vcombine.low %v529_v42, %v3712_v50  ;;  %v770_v62 = vrot.slane %v762_v48, %v4403_v17  ;;  %v575_v0 = vrot.slane %v561_v44, %v4403_v17  ;;  %v2737_v32 = vld [vmem:[%s6198_s5 + $0xf8] sm:$0xff]  ;;  %v3715_v36 = vld.sshfl [vmem:[%s4391_s26 + $0x48] sm:$0x3 pattern:$0x76325410]  ;;  %v2720_v44 = vld [vmem:[%s6198_s5 + $0x70] sm:$0xff] }
  0x1a   : > { %4054 = vmatpush3.msra.mxu0 %v738_v18  ;;  %v753_v46 = vrot.slane %v745_v34, %v4403_v17  ;;  %v777_v63 = vrot.slane %v763_v49, %v4403_v17  ;;  %v796_v3 = vcombine.low %v551_v41, %v553_v53  ;;  %v797_v4 = vcombine.low %v3713_v57, %v568_v54  ;;  %v2801_v50 = vld [vmem:[%s6198_s5 + $0x2f8] sm:$0xff]  ;;  %vm4992_vm7 = vmor %vm4963_vm6, %vm2024_vm4 }
  0x1b   : > { %4055 = vmatprep.subr.mxu0 %v6206_v1  ;;  %v760_v47 = vrot.slane %v746_v35, %v4403_v17  ;;  %v592_v5 = vrot.slane %v457_v51, %v4403_v17  ;;  %1455 = vperm.xlu0 %4233, %v1430_v59   ;;  %v787_v6 = vrot.slane %v779_v55, %v4403_v17  ;;  %v2735_v51 = vld [vmem:[%s6198_s5 + $0xe8] sm:$0xff]  ;;  %v3716_v53 = vld.sshfl [vmem:[%s4391_s26 + $0x58] sm:$0x3 pattern:$0x76325410] }
  0x1c   : > { %4056 = vmatpush3.msra.mxu0 %v737_v19  ;;  %v794_v7 = vrot.slane %v780_v56, %v4403_v17  ;;  %v576_v8 = vcombine.high %v568_v54, %v568_v54  ;;  %v599_v9 = vrot.slane %v585_v58, %v4403_v17  ;;  %v778_v12 = vcombine.low %v770_v62, %v777_v63  ;;  %v1439_v56 = vld [vmem:[%s6194_s1 + $0x50] sm:$0xff]  ;;  %v2785_v57 = vld [vmem:[%s6198_s5 + $0x278] sm:$0xff] }
  0x1d   : > { %4057 = vmatprep.subr.mxu0 %v6206_v1  ;;  %v761_v61 = vcombine.low %v753_v46, %v760_v47  ;;  %v577_v13 = vcombine.high %v575_v0, %v575_v0  ;;  %1463 = vperm.xlu1 %4234, %v1432_v2   ;;  %v804_v18 = vrot.slane %v796_v3, %v4403_v17  ;;  %v1438_v46 = vld [vmem:[%s6194_s1 + $0x48] sm:$0x3]  ;;  %v1440_v62 = vld [vmem:[%s6194_s1 + $0x58] sm:$0x3] }
  0x1e   : > { %4058 = vmatpush3.msra.mxu0 %v736_v23  ;;  %v811_v19 = vrot.slane %v797_v4, %v4403_v17  ;;  %v600_v20 = vcombine.high %v592_v5, %v592_v5  ;;  %v795_v21 = vcombine.low %v787_v6, %v794_v7  ;;  %v813_v22 = vcombine.low %v576_v8, %v575_v0  ;;  %v1441_v7 = vld [vmem:[%s6194_s1 + $0x60] sm:$0xff] }
  0x1f   : > { %4059 = vmatprep.subr.mxu0 %v6206_v1  ;;  %1467 = vperm.xlu0 %4233, %v1433_v11   ;;  %v601_v23 = vcombine.high %v599_v9, %v599_v9  ;;  %v814_v25 = vcombine.low %v577_v13, %v3714_v15  ;;  %v609_v26 = vcombine.high %v459_v14, %v459_v14 }
  0x20   : > { %4060 = vmatpush3.msra.mxu0 %v735_v24  ;;  %v1435_v24 = vld [vmem:[%s6194_s1 + $0x30] sm:$0xff]  ;;  %v616_v27 = vrot.slane %v459_v14, %v4403_v17  ;;  %v830_v31 = vcombine.low %v592_v5, %v600_v20  ;;  %v821_v34 = vrot.slane %v813_v22, %v4403_v17  ;;  %v640_v37 = vrot.slane %v461_v28, %v4403_v17  ;;  %v3717_v5 = vld.sshfl [vmem:[%s4391_s26 + $0x68] sm:$0x3 pattern:$0x76325410] }
  0x21   : > { %4061 = vmatprep.subr.mxu0 %v6206_v1  ;;  %1471 = vperm.xlu1 %4234, %v1434_v16   ;;  %v831_v35 = vcombine.low %v599_v9, %v601_v23  ;;  %v633_v38 = vcombine.high %v461_v28, %v461_v28  ;;  %v828_v41 = vrot.slane %v814_v25, %v4403_v17  ;;  %v467_v20 = vld [vmem:[%s4391_s26 + $0x90] sm:$0xff]  ;;  %v3718_v25 = vld.sshfl [vmem:[%s4391_s26 + $0x78] sm:$0x3 pattern:$0x76325410] }
  0x22   : > { %4062 = vmatpush3.msra.mxu0 %v734_v30  ;;  %v812_v30 = vcombine.low %v804_v18, %v811_v19  ;;  %3769 = vmatprep.subr.mxu1 %v2737_v32  ;;  %v623_v42 = vrot.slane %v609_v26, %v4403_v17  ;;  %v624_v43 = vcombine.high %v616_v27, %v616_v27  ;;  %v1444_v26 = vld [vmem:[%s6194_s1 + $0x78] sm:$0x3] }
  0x23   : > { %4063 = vmatprep.subr.mxu0 %v6206_v1  ;;  %1475 = vperm.xlu0 %4233, %v1435_v24   ;;  %v838_v47 = vrot.slane %v830_v31, %v4403_v17  ;;  %v847_v48 = vcombine.low %v3715_v36, %v616_v27  ;;  %v648_v54 = vcombine.high %v640_v37, %v640_v37 }
  0x24   : > { %4064 = vmatpush3.msra.mxu0 %v733_v33  ;;  %v2721_v33 = vld [vmem:[%s6198_s5 + $0x78] sm:$0xff]  ;;  %v625_v49 = vcombine.high %v623_v42, %v623_v42  ;;  %v647_v55 = vrot.slane %v633_v38, %v4403_v17  ;;  %v829_v58 = vcombine.low %v821_v34, %v828_v41  ;;  %v848_v59 = vcombine.low %v624_v43, %v623_v42  ;;  %v1447_v42 = vld [vmem:[%s6194_s1 + $0x90] sm:$0xff] }
  0x25   : > { %4065 = vmatprep.subr.mxu0 %v6206_v1  ;;  %1479 = vperm.xlu1 %4234, %v1436_v29   ;;  %v855_v3 = vrot.slane %v847_v48, %v4403_v17  ;;  %v865_v4 = vcombine.low %v640_v37, %v648_v54  ;;  %v705_v28 = vcombine.high %v467_v20, %v467_v20  ;;  %v1446_v37 = vld [vmem:[%s6194_s1 + $0x88] sm:$0x3] }
  0x26   : > { %4066 = vmatpush3.msra.mxu0 %v732_v40  ;;  %v2736_v40 = vld [vmem:[%s6198_s5 + $0xf0] sm:$0xff]  ;;  %3770 = vmatpush3.msra.mxu1 %v2721_v33  ;;  %v864_v63 = vcombine.low %v625_v49, %v3716_v53  ;;  %v649_v6 = vcombine.high %v647_v55, %v647_v55  ;;  %v862_v8 = vrot.slane %v848_v59, %v4403_v17  ;;  %v1445_v33 = vld [vmem:[%s6194_s1 + $0x80] sm:$0xff] }
  0x27   : > { %4067 = vmatprep.subr.mxu0 %v6206_v1  ;;  %1483 = vperm.xlu0 %4233, %v1437_v39   ;;  %v879_v15 = vrot.slane %v865_v4, %v4403_v17  ;;  %v712_v36 = vrot.slane %v467_v20, %v4403_v17  ;;  %v719_v41 = vrot.slane %v705_v28, %v4403_v17  ;;  %v2733_v4 = vld [vmem:[%s6198_s5 + $0xd8] sm:$0xff]  ;;  %v2714_v20 = vld [vmem:[%s6198_s5 + $0x40] sm:$0xff]  ;;  %v2712_v28 = vld [vmem:[%s6198_s5 + $0x30] sm:$0xff] }
  0x28   : > { %4068 = vmatpush3.msra.mxu0 %v731_v45  ;;  %v463_v45 = vld [vmem:[%s4391_s26 + $0x70] sm:$0xff]  ;;  %3771 = vmatprep.subr.mxu1 %v2736_v40  ;;  %v872_v13 = vrot.slane %v864_v63, %v4403_v17  ;;  %v881_v16 = vcombine.low %v647_v55, %v649_v6  ;;  %v863_v22 = vcombine.low %v855_v3, %v862_v8  ;;  %v2734_v63 = vld [vmem:[%s6198_s5 + $0xe0] sm:$0xff]  ;;  %v2799_v3 = vld [vmem:[%s6198_s5 + $0x2e8] sm:$0xff] }
  0x29   : > { %4069 = vmatprep.subr.mxu0 %v6206_v1  ;;  %3772 = vmatpush3.msra.mxu1 %v2720_v44  ;;  %v664_v0 = vrot.slane %v463_v45, %v4403_v17  ;;  %v2717_v6 = vld [vmem:[%s6198_s5 + $0x58] sm:$0xff]  ;;  %v2732_v8 = vld [vmem:[%s6198_s5 + $0xd0] sm:$0xff] }
  0x2a   : > { %4070 = vmatpush3.msra.mxu0 %v730_v52  ;;  %v845_v52 = vrot.slane %v831_v35, %v4403_v17  ;;  %1487 = vperm.xlu1 %4234, %v1438_v46   ;;  %v880_v29 = vcombine.low %v872_v13, %v879_v15  ;;  %v720_v46 = vcombine.high %v712_v36, %v712_v36  ;;  %v2731_v13 = vld [vmem:[%s6198_s5 + $0xc8] sm:$0xff] }
  0x2b   : > { %4071 = vmatprep.subr.mxu0 %v6206_v1  ;;  %3773 = vmatprep.subr.mxu1 %v2735_v51  ;;  %v882_v14 = vcombine.low %v3717_v5, %v664_v0  ;;  %v672_v18 = vcombine.high %v664_v0, %v664_v0  ;;  %v2784_v0 = vld [vmem:[%s6198_s5 + $0x270] sm:$0xff]  ;;  %v2783_v5 = vld [vmem:[%s6198_s5 + $0x268] sm:$0xff] }
  0x2c   : > { %4072 = vmatpush3.msra.mxu0 %v729_v60  ;;  %v657_v60 = vcombine.high %v463_v45, %v463_v45  ;;  %1491 = vperm.xlu0 %4233, %v1439_v56   ;;  %v846_v2 = vcombine.low %v838_v47, %v845_v52  ;;  %v3719_v45 = vld.sshfl [vmem:[%s4391_s26 + $0x88] sm:$0x3 pattern:$0x76325410]  ;;  %v1448_v47 = vld [vmem:[%s6194_s1 + $0x98] sm:$0x3]  ;;  %v933_v52 = vcombine.low %v720_v46, %v719_v41 }
  0x2d   : > { %4074 = vmatmul.mubr.f32.vlgmr.msra.gmra.mxu0 %v761_v61  ;;  %3881 = vmatprep.subr.mxu0 %v2801_v50  ;;  %v465_v61 = vld [vmem:[%s4391_s26 + $0x80] sm:$0xff]  ;;  %v896_v27 = vrot.slane %v882_v14, %v4403_v17  ;;  %v932_v49 = vcombine.low %v3719_v45, %v712_v36  ;;  %v721_v56 = vcombine.high %v719_v41, %v719_v41  ;;  %v2781_v14 = vld [vmem:[%s6198_s5 + $0x258] sm:$0xff]  ;;  %v2715_v15 = vld [vmem:[%s6198_s5 + $0x48] sm:$0xff] }
  0x2e   : > { %4076 = vmatprep.mubr.msk.f32.mxu0 %vm4270_vm0, %v6206_v1  ;;  %3882 = vmatpush3.msra.mxu0 %v2785_v57  ;;  %v671_v9 = vrot.slane %v657_v60, %v4403_v17  ;;  %v681_v11 = vcombine.high %v465_v61, %v465_v61  ;;  %v688_v19 = vrot.slane %v465_v61, %v4403_v17  ;;  %v3720_v57 = vld.sshfl [vmem:[%s4391_s26 + $0x98] sm:$0x3 pattern:$0x76325410]  ;;  %v2719_v61 = vld [vmem:[%s6198_s5 + $0x68] sm:$0xff]  ;;  %v2710_v36 = vld [vmem:[%s6198_s5 + $0x20] sm:$0xff] }
  0x2f   : > { %1495 = vperm.xlu1 %4234, %v1440_v62   ;;  %v940_v54 = vrot.slane %v932_v49, %v4403_v17  ;;  %v947_v55 = vrot.slane %v933_v52, %v4403_v17  ;;  %v949_v59 = vcombine.low %v721_v56, %v3720_v57  ;;  %v2800_v62 = vld [vmem:[%s6198_s5 + $0x2f0] sm:$0xff]  ;;  %3774 = vmatpush3.msra.mxu1 %v2719_v61  ;;  %v2790_v41 = vld [vmem:[%s6198_s5 + $0x2a0] sm:$0xff]  ;;  %v2789_v45 = vld [vmem:[%s6198_s5 + $0x298] sm:$0xff] }
  0x30   : > { %1499 = vperm.xlu0 %4233, %v1441_v7   ;;  %v673_v23 = vcombine.high %v671_v9, %v671_v9  ;;  %v695_v24 = vrot.slane %v681_v11, %v4403_v17  ;;  %v898_v31 = vcombine.low %v672_v18, %v671_v9  ;;  %v696_v32 = vcombine.high %v688_v19, %v688_v19  ;;  %v2798_v7 = vld [vmem:[%s6198_s5 + $0x2e0] sm:$0xff]  ;;  %v2716_v11 = vld [vmem:[%s6198_s5 + $0x50] sm:$0xff]  ;;  %v2723_v46 = vld [vmem:[%s6198_s5 + $0x88] sm:$0xff] }
  0x31   : > { %4077 = vmatmul.mubr.f32.gmra.mxu0 %v778_v12  ;;  %v1442_v12 = vld [vmem:[%s6194_s1 + $0x68] sm:$0x3]  ;;  %v956_v60 = vrot.slane %v949_v59, %v4403_v17  ;;  %3883 = vmatprep.subr.mxu0 %v2800_v62  ;;  %v2782_v9 = vld [vmem:[%s6198_s5 + $0x260] sm:$0xff]  ;;  %v2788_v49 = vld [vmem:[%s6198_s5 + $0x290] sm:$0xff] }
  0x32   : > { %4079 = vmatprep.mubr.msk.f32.mxu0 %vm4270_vm0, %v6206_v1  ;;  %v899_v34 = vcombine.low %v673_v23, %v3718_v25  ;;  %v697_v35 = vcombine.high %v695_v24, %v695_v24  ;;  %v906_v39 = vrot.slane %v898_v31, %v4403_v17  ;;  %v915_v40 = vcombine.low %v688_v19, %v696_v32  ;;  %v2730_v18 = vld [vmem:[%s6198_s5 + $0xc0] sm:$0xff]  ;;  %v2780_v19 = vld [vmem:[%s6198_s5 + $0x250] sm:$0xff]  ;;  %v2779_v23 = vld [vmem:[%s6198_s5 + $0x248] sm:$0xff] }
  0x33   : > { %1503 = vperm.xlu1 %4234, %v1442_v12   ;;  %3775 = vmatprep.subr.mxu1 %v2734_v63  ;;  %v2797_v12 = vld [vmem:[%s6198_s5 + $0x2d8] sm:$0xff]  ;;  %v2794_v25 = vld [vmem:[%s6198_s5 + $0x2c0] sm:$0xff]  ;;  %v2711_v32 = vld [vmem:[%s6198_s5 + $0x28] sm:$0xff] }
  0x34   : > { %v913_v43 = vrot.slane %v899_v34, %v4403_v17  ;;  %v916_v44 = vcombine.low %v695_v24, %v697_v35  ;;  %v923_v48 = vrot.slane %v915_v40, %v4403_v17  ;;  %3884 = vmatpush3.msra.mxu0 %v2784_v0  ;;  %v2713_v24 = vld [vmem:[%s6198_s5 + $0x38] sm:$0xff]  ;;  %v2726_v34 = vld [vmem:[%s6198_s5 + $0xa0] sm:$0xff]  ;;  %v2776_v35 = vld [vmem:[%s6198_s5 + $0x230] sm:$0xff] }
  0x35   : > { %4080 = vmatmul.mubr.f32.gmra.mxu0 %v795_v21  ;;  %v1443_v21 = vld [vmem:[%s6194_s1 + $0x70] sm:$0xff]  ;;  %3885 = vmatprep.subr.mxu0 %v2799_v3  ;;  %v2777_v31 = vld [vmem:[%s6198_s5 + $0x238] sm:$0xff]  ;;  %v2706_v52 = vld [vmem:[%s6198_s5] sm:$0xff] }
  0x36   : > { %4082 = vmatprep.mubr.msk.f32.mxu0 %vm4270_vm0, %v6206_v1  ;;  %1507 = vperm.xlu0 %4233, %v1443_v21   ;;  %v914_v50 = vcombine.low %v906_v39, %v913_v43  ;;  %v930_v51 = vrot.slane %v916_v44, %v4403_v17  ;;  %v2795_v21 = vld [vmem:[%s6198_s5 + $0x2c8] sm:$0xff]  ;;  %v2709_v40 = vld [vmem:[%s6198_s5 + $0x18] sm:$0xff]  ;;  %v2774_v43 = vld [vmem:[%s6198_s5 + $0x220] sm:$0xff] }
  0x37   : > { %1511 = vperm.xlu1 %4234, %v1444_v26   ;;  %3886 = vmatpush3.msra.mxu0 %v2783_v5  ;;  %v2728_v26 = vld [vmem:[%s6198_s5 + $0xb0] sm:$0xff]  ;;  %v2775_v39 = vld [vmem:[%s6198_s5 + $0x228] sm:$0xff]  ;;  %v2770_v56 = vld [vmem:[%s6198_s5 + $0x200] sm:$0xff] }
  0x38   : > { %v931_v53 = vcombine.low %v923_v48, %v930_v51  ;;  %3887 = vmatprep.subr.mxu0 %v2798_v7  ;;  %v2708_v44 = vld [vmem:[%s6198_s5 + $0x10] sm:$0xff]  ;;  %v2707_v48 = vld [vmem:[%s6198_s5 + $0x8] sm:$0xff]  ;;  %v2769_v57 = vld [vmem:[%s6198_s5 + $0x1f8] sm:$0xff]  ;;  %v4273_v7 = vmov 269488144  }
  0x39   : > { %4083 = vmatmul.mubr.f32.gmra.mxu0 %v812_v30  ;;  %v889_v30 = vrot.slane %v881_v16, %v4403_v17  ;;  %v2796_v16 = vld [vmem:[%s6198_s5 + $0x2d0] sm:$0xff] }
  0x3a   : > { %4085 = vmatprep.mubr.msk.f32.mxu0 %vm4270_vm0, %v6206_v1  ;;  %1515 = vperm.xlu0 %4233, %v1445_v33   ;;  %v2792_v33 = vld [vmem:[%s6198_s5 + $0x2b0] sm:$0xff] }
  0x3b   : > { %v897_v38 = vcombine.low %v889_v30, %v896_v27  ;;  %1519 = vperm.xlu1 %4234, %v1446_v37   ;;  %3888 = vmatpush3.msra.mxu0 %v2782_v9  ;;  %v2778_v27 = vld [vmem:[%s6198_s5 + $0x240] sm:$0xff]  ;;  %v2727_v30 = vld [vmem:[%s6198_s5 + $0xa8] sm:$0xff]  ;;  %v2772_v51 = vld [vmem:[%s6198_s5 + $0x210] sm:$0xff]  ;;  %v4274_v9 = vmov 842150450  }
  0x3c   : > { %3889 = vmatprep.subr.mxu0 %v2797_v12  ;;  %v2791_v37 = vld [vmem:[%s6198_s5 + $0x2a8] sm:$0xff]  ;;  %v4275_v12 = vmov 1414812756  }
  0x3d   : > { %4086 = vmatmul.mubr.f32.gmra.mxu0 %v829_v58  ;;  %v948_v58 = vcombine.low %v940_v54, %v947_v55  ;;  %v2771_v54 = vld [vmem:[%s6198_s5 + $0x208] sm:$0xff]  ;;  %v2786_v55 = vld [vmem:[%s6198_s5 + $0x280] sm:$0xff] }
  0x3e   : > { %4088 = vmatprep.mubr.msk.f32.mxu0 %vm4270_vm0, %v6206_v1  ;;  %1523 = vperm.xlu0 %4233, %v1447_v42   ;;  %v2724_v42 = vld [vmem:[%s6198_s5 + $0x90] sm:$0xff] }
  0x3f   : > { %1527 = vperm.xlu1 %4234, %v1448_v47   ;;  %3890 = vmatpush3.msra.mxu0 %v2781_v14  ;;  %v2773_v47 = vld [vmem:[%s6198_s5 + $0x218] sm:$0xff]  ;;  %v4276_v14 = vmov 1987475062  }
  0x40   : > { %3891 = vmatprep.subr.mxu0 %v2796_v16 }
  0x41   : > { %4089 = vmatmul.mubr.f32.gmra.mxu0 %v846_v2  ;;  %v2718_v2 = vld [vmem:[%s6198_s5 + $0x60] sm:$0xff] }
  0x42   : > { %4091 = vmatprep.mubr.msk.f32.mxu0 %vm4270_vm0, %v6206_v1  ;;  %3776 = vmatpush3.msra.mxu1 %v2718_v2 }
  0x43   : > { %3777 = vmatprep.subr.mxu1 %v2733_v4  ;;  %3892 = vmatpush3.msra.mxu0 %v2780_v19 }
  0x44   : > { %3778 = vmatpush3.msra.mxu1 %v2717_v6  ;;  %3893 = vmatprep.subr.mxu0 %v2795_v21 }
  0x45   : > { %4092 = vmatmul.mubr.f32.gmra.mxu0 %v863_v22  ;;  %3779 = vmatprep.subr.mxu1 %v2732_v8  ;;  %v2729_v22 = vld [vmem:[%s6198_s5 + $0xb8] sm:$0xff]  ;;  %v1530_v8 = vunpack.c.l.s4 %v4273_v7 }
  0x46   : > { %4094 = vmatprep.mubr.msk.f32.mxu0 %vm4270_vm0, %v6206_v1  ;;  %3780 = vmatpush3.msra.mxu1 %v2716_v11  ;;  %v1537_v11 = vunpack.c.l.s4 %v4274_v9 }
  0x47   : > { %3781 = vmatprep.subr.mxu1 %v2731_v13  ;;  %3894 = vmatpush3.msra.mxu0 %v2779_v23  ;;  %v1544_v13 = vunpack.c.l.s4 %v4275_v12 }
  0x48   : > { %3782 = vmatpush3.msra.mxu1 %v2715_v15  ;;  %3895 = vmatprep.subr.mxu0 %v2794_v25  ;;  %v1551_v15 = vunpack.c.l.s4 %v4276_v14 }
  0x49   : > { %4095 = vmatmul.mubr.f32.gmra.mxu0 %v880_v29  ;;  %3783 = vmatprep.subr.mxu1 %v2730_v18  ;;  %v2793_v29 = vld [vmem:[%s6198_s5 + $0x2b8] sm:$0xff]  ;;  %v1531_v18 = vunpack.c.0.s8 %v1530_v8  ;;  %v1545_v21 = vunpack.c.0.s8 %v1544_v13 }
  0x4a   : > { %4097 = vmatprep.mubr.msk.f32.mxu0 %vm4270_vm0, %v6206_v1  ;;  %3784 = vmatpush3.msra.mxu1 %v2714_v20  ;;  %v1538_v20 = vunpack.c.0.s8 %v1537_v11 }
  0x4b   : > { %3785 = vmatprep.subr.mxu1 %v2729_v22  ;;  %3896 = vmatpush3.msra.mxu0 %v2778_v27  ;;  %v1552_v22 = vunpack.c.0.s8 %v1551_v15 }
  0x4c   : > { %3786 = vmatpush3.msra.mxu1 %v2713_v24  ;;  %3897 = vmatprep.subr.mxu0 %v2793_v29  ;;  %v4818_v24 = vsub.s32 %v1531_v18, %v4380_v10  ;;  %v4821_v25 = vsub.s32 %v1538_v20, %v4380_v10 }
  0x4d   : > { %4098 = vmatmul.mubr.f32.gmra.mxu0 %v897_v38  ;;  %3787 = vmatprep.subr.mxu1 %v2728_v26  ;;  %v2725_v38 = vld [vmem:[%s6198_s5 + $0x98] sm:$0xff]  ;;  %v4824_v26 = vsub.s32 %v1545_v21, %v4380_v10  ;;  %v4827_v27 = vsub.s32 %v1552_v22, %v4380_v10 }
  0x4e   : > { %4100 = vmatprep.mubr.msk.f32.mxu0 %vm4270_vm0, %v6206_v1  ;;  %3788 = vmatpush3.msra.mxu1 %v2712_v28 }
  0x4f   : > { %3789 = vmatprep.subr.mxu1 %v2727_v30  ;;  %3898 = vmatpush3.msra.mxu0 %v2777_v31 }
  0x50   : > { %3790 = vmatpush3.msra.mxu1 %v2711_v32  ;;  %3899 = vmatprep.subr.mxu0 %v2792_v33 }
  0x51   : > { %4101 = vmatmul.mubr.f32.gmra.mxu0 %v914_v50  ;;  %3791 = vmatprep.subr.mxu1 %v2726_v34  ;;  %v2722_v50 = vld [vmem:[%s6198_s5 + $0x80] sm:$0xff] }
  0x52   : > { %4103 = vmatprep.mubr.msk.f32.mxu0 %vm4270_vm0, %v6206_v1  ;;  %3900 = vmatpush3.msra.mxu0 %v2776_v35 }
  0x53   : > { %3792 = vmatpush3.msra.mxu1 %v2710_v36  ;;  %3901 = vmatprep.subr.mxu0 %v2791_v37 }
  0x54   : > { %3793 = vmatprep.subr.mxu1 %v2725_v38  ;;  %3902 = vmatpush3.msra.mxu0 %v2775_v39 }
  0x55   : > { %4104 = vmatmul.mubr.f32.gmra.mxu0 %v931_v53  ;;  %3794 = vmatpush3.msra.mxu1 %v2709_v40  ;;  %v2787_v53 = vld [vmem:[%s6198_s5 + $0x288] sm:$0xff] }
  0x56   : > { %4106 = vmatprep.mubr.msk.f32.mxu0 %vm4270_vm0, %v6206_v1  ;;  %3903 = vmatprep.subr.mxu0 %v2790_v41 }
  0x57   : > { %3795 = vmatprep.subr.mxu1 %v2724_v42  ;;  %3904 = vmatpush3.msra.mxu0 %v2774_v43  ;;  %v4862_v42 = vld [vmem:[%s6196_s3] ss:$0 sm:$0xff] }
  0x58   : > { %3796 = vmatpush3.msra.mxu1 %v2708_v44  ;;  %3905 = vmatprep.subr.mxu0 %v2789_v45 }
  0x59   : > { %4107 = vmatmul.mubr.f32.gmra.mxu0 %v948_v58  ;;  %3797 = vmatprep.subr.mxu1 %v2723_v46  ;;  %v4786_v58 = vld [vmem:[%s6198_s5 + $0x478] sm:$0xff] }
  0x5a   : > { %4109 = vmatprep.mubr.msk.f32.mxu0 %vm4270_vm0, %v6206_v1  ;;  %3906 = vmatpush3.msra.mxu0 %v2773_v47 }
  0x5b   : > { %3798 = vmatpush3.msra.mxu1 %v2707_v48  ;;  %3907 = vmatprep.subr.mxu0 %v2788_v49 }
  0x5c   : > { %3799 = vmatprep.subr.mxu1 %v2722_v50  ;;  %3908 = vmatpush3.msra.mxu0 %v2772_v51 }
  0x5d   : > { %4110 = vmatmul.mubr.f32.gmra.mxu0 %v956_v60  ;;  %3800 = vmatpush3.msra.mxu1 %v2706_v52 }
  0x5e   : > { %3909 = vmatprep.subr.mxu0 %v2787_v53  ;;  %3825 = vmatprep.subr.mxu1 %v2769_v57  ;;  %v4885_v53 = vld [vmem:[%s6197_s4] ss:$0 sm:$0xff] }
  0x5f   : > { %3910 = vmatpush3.msra.mxu0 %v2771_v54 }
  0x60   : > { %3911 = vmatprep.subr.mxu0 %v2786_v55 }
  0x61   : > { %3912 = vmatpush3.msra.mxu0 %v2770_v56 }
  0x62   : > { %4112 = vmatprep.subr.mxu0 %v4786_v58 }
  0x8b   : > { %v4789_v59 = vpop.permute.xlu0 %1451 }
  0x8c   : > { %v4791_v60 = vpop.permute.xlu1 %1459  ;;  %v1535_v29 = vrot.slane %v4789_v59, %v4818_v24  ;;  %v1542_v30 = vrot.slane %v4789_v59, %v4821_v25  ;;  %v1549_v31 = vrot.slane %v4789_v59, %v4824_v26  ;;  %v1556_v32 = vrot.slane %v4789_v59, %v4827_v27 }
  0x8d   : > { %v1570_v10 = vrot.slane %v4791_v60, %v4818_v24  ;;  %v1577_v34 = vrot.slane %v4791_v60, %v4821_v25  ;;  %v1584_v35 = vrot.slane %v4791_v60, %v4824_v26  ;;  %v1591_v36 = vrot.slane %v4791_v60, %v4827_v27 }
  0x96   : > { %v4793_v61 = vpop.permute.xlu0 %1455 }
  0x97   : > { %v1563_v37 = vrot.slane %v4793_v61, %v4818_v24 }
  0x98   : > { %v4795_v62 = vpop.permute.xlu1 %1463 }
  0x99   : > { %v1598_v38 = vrot.slane %v4795_v62, %v4818_v24 }
  0x9a   : > { %v4797_v63 = vpop.permute.xlu0 %1467 }
  0x9b   : > { %v1605_v39 = vrot.slane %v4797_v63, %v4818_v24  ;;  %v1612_v40 = vrot.slane %v4797_v63, %v4821_v25  ;;  %v1619_v41 = vrot.slane %v4797_v63, %v4824_v26  ;;  %v1626_v43 = vrot.slane %v4797_v63, %v4827_v27 }
  0x9c   : > { %v4799_v0 = vpop.permute.xlu1 %1471 }
  0x9d   : > { %v1633_v44 = vrot.slane %v4799_v0, %v4818_v24 }
  0x9e   : > { %v4801_v2 = vpop.permute.xlu0 %1475 }
  0x9f   : > { %v1640_v45 = vrot.slane %v4801_v2, %v4818_v24  ;;  %v1647_v46 = vrot.slane %v4801_v2, %v4821_v25  ;;  %v1654_v48 = vrot.slane %v4801_v2, %v4824_v26 }
  0xa0   : > { %v4803_v3 = vpop.permute.xlu1 %1479 }
  0xa2   : > { %v4805_v4 = vpop.permute.xlu0 %1483 }
  0xa5   : > { %v4807_v5 = vpop.permute.xlu1 %1487 }
  0xa7   : > { %v4809_v6 = vpop.permute.xlu0 %1491 }
  0xaa   : > { %v4811_v16 = vpop.permute.xlu1 %1495 }
  0xab   : > { %v4813_v19 = vpop.permute.xlu0 %1499 }
  0xae   : > { %v4815_v23 = vpop.permute.xlu1 %1503 }
  0xb1   : > { %v4829_v28 = vpop.permute.xlu0 %1507 }
  0xb2   : > { %v4841_v33 = vpop.permute.xlu1 %1511 }
  0xb5   : > { %v4872_v47 = vpop.permute.xlu0 %1515 }
  0xb6   : > { %v4902_v13 = vpop.permute.xlu1 %1519 }
  0xb9   : > { %v4924_v21 = vpop.permute.xlu0 %1523 }
  0xba   : > { %v4952_v8 = vpop.permute.xlu1 %1527 }
  0xed   : > { %v1036_v52 = vpop.f32.mrf.mxu0 }
  0xee   : > { %v1107_v57 = vmul.f32 %v4862_v42, %v1036_v52 }
  0xef   : > { %v4075_v12 = vpop.f32.mrf.mxu0 }
  0xf0   : > { %v1127_v15 = vadd.f32 %v4885_v53, %v1107_v57 }
  0xf1   : > { %v1041_v12 = vpop.f32.mrf.mxu0 }
  0xf2   : > { %v1140_v57 = vmax.f32 %v1127_v15, 0.0  ;;  %v1108_v50 = vmul.f32 %v4862_v42, %v1041_v12 }
  0xf3   : > { %v4078_v14 = vpop.f32.mrf.mxu0 }
  0xf4   : > { %v1166_v20 = vcombine.high %v1140_v57, %v1140_v57  ;;  %v1173_v1 = vrot.slane %v1140_v57, %v4403_v17  ;;  %v1128_v22 = vadd.f32 %v4885_v53, %v1108_v50 }
  0xf5   : > { %v1046_v52 = vpop.f32.mrf.mxu0 }
  0xf6   : > { %v1180_v50 = vrot.slane %v1166_v20, %v4403_v17  ;;  %v1181_v57 = vcombine.high %v1173_v1, %v1173_v1  ;;  %v4958_v14 = vmul.f32 %v1535_v29, %v1173_v1  ;;  %v1141_v15 = vmax.f32 %v1128_v22, 0.0 }
  0xf7   : > { %v1109_v9 = vmul.f32 %v4862_v42, %v1046_v52  ;;  %v4081_v11 = vpop.f32.mrf.mxu0 }
  0xf8   : > { %v1182_v29 = vcombine.high %v1180_v50, %v1180_v50  ;;  %v4977_v18 = vmul.f32 %v1542_v30, %v1181_v57  ;;  %v4982_v22 = vmul.f32 %v1549_v31, %v1180_v50  ;;  %v3723_v52 = vrot.slane %v4958_v14, 9  ;;  %v2815_v30 = vld [vmem:[%s6198_s5 + $0x368] sm:$0xff] }
  0xf9   : > { %v1183_v56 = vcombine.high %v1141_v15, %v1141_v15  ;;  %v1190_v20 = vrot.slane %v1141_v15, %v4403_v17  ;;  %v1129_v1 = vadd.f32 %v4885_v53, %v1109_v9  ;;  %v1051_v7 = vpop.f32.mrf.mxu0 }
  0xfa   : > { %6214 = vst [vmem:[#allocation2_spill] sm:$0xff] %v4977_v18  ;;  %6215 = vst [vmem:[#allocation3_spill] sm:$0xff] %v4982_v22  ;;  %v4999_v31 = vmul.f32 %v1556_v32, %v1182_v29  ;;  %v1110_v15 = vmul.f32 %v4862_v42, %v1051_v7  ;;  %v2028_v9 = vrot.slane %v4977_v18, 7  ;;  %v2031_v7 = vrot.slane %v4982_v22, 7 }
  0xfb   : > { %v1197_v57 = vrot.slane %v1183_v56, %v4403_v17  ;;  %v1198_v11 = vcombine.high %v1190_v20, %v1190_v20  ;;  %v5009_v12 = vmul.f32 %v1563_v37, %v1190_v20  ;;  %v1142_v55 = vmax.f32 %v1129_v1, 0.0  ;;  %v4084_v54 = vpop.f32.mrf.mxu0 }
  0xfc   : > { %v1130_v59 = vadd.f32 %v4885_v53, %v1110_v15  ;;  %v5014_v32 = vsel %vm4992_vm7, %v3723_v52, %v2028_v9  ;;  %v2030_v29 = vrot.slane %v2028_v9, 2 }
  0xfd   : > { %v1199_v50 = vcombine.high %v1197_v57, %v1197_v57  ;;  %v5020_v56 = vmul.f32 %v1570_v10, %v1198_v11  ;;  %v5025_v61 = vmul.f32 %v1577_v34, %v1197_v57  ;;  %v1056_v54 = vpop.f32.mrf.mxu0  ;;  %v2455_v20 = vcombine.low %v4999_v31, %v5009_v12 }
  0xfe   : > { %v1200_v1 = vcombine.high %v1142_v55, %v1142_v55  ;;  %v1207_v52 = vrot.slane %v1142_v55, %v4403_v17  ;;  %v1143_v15 = vmax.f32 %v1130_v59, 0.0  ;;  %v1111_v34 = vmul.f32 %v4862_v42, %v1056_v54 }
  0xff   : > { %v5034_v10 = vmul.f32 %v1584_v35, %v1199_v50  ;;  %v4087_v9 = vpop.f32.mrf.mxu0  ;;  %v2032_v57 = vsel %vm4992_vm7, %v2030_v29, %v2031_v7  ;;  %v5041_v51 = vrot.slane %v2455_v20, %v4403_v17  ;;  %v2033_v11 = vrot.slane %v2031_v7, 2 }
 0x100   : > { %v1214_v37 = vrot.slane %v1200_v1, %v4403_v17  ;;  %v1215_v55 = vcombine.high %v1207_v52, %v1207_v52  ;;  %v5047_v59 = vmul.f32 %v1591_v36, %v1207_v52  ;;  %v1217_v35 = vcombine.high %v1143_v15, %v1143_v15 }
 0x101   : > { %6218 = vst [vmem:[#allocation4_spill] sm:$0xff] %v5041_v51  ;;  %v1224_v50 = vrot.slane %v1143_v15, %v4403_v17  ;;  %v1131_v54 = vadd.f32 %v4885_v53, %v1111_v34  ;;  %v1061_v9 = vpop.f32.mrf.mxu0  ;;  %v6231_v51 = vrot.slane %v5020_v56, 9 }
 0x102   : > { %v1216_v49 = vcombine.high %v1214_v37, %v1214_v37  ;;  %v5054_v29 = vmul.f32 %v1598_v38, %v1215_v55  ;;  %v5059_v20 = vmul.f32 %v1605_v39, %v1214_v37  ;;  %v1231_v36 = vrot.slane %v1217_v35, %v4403_v17 }
 0x103   : > { %v1232_v1 = vcombine.high %v1224_v50, %v1224_v50  ;;  %v5066_v7 = vmul.f32 %v1619_v41, %v1224_v50  ;;  %v1144_v52 = vmax.f32 %v1131_v54, 0.0  ;;  %v4090_v15 = vpop.f32.mrf.mxu0  ;;  %v1112_v37 = vmul.f32 %v4862_v42, %v1061_v9 }
 0x104   : > { %v5071_v62 = vmul.f32 %v1612_v40, %v1216_v49  ;;  %v1233_v34 = vcombine.high %v1231_v36, %v1231_v36  ;;  %v5084_v41 = vmul.f32 %v1633_v44, %v1231_v36  ;;  %v2034_v44 = vrot.slane %v4999_v31, 7 }
 0x105   : > { %v5079_v55 = vmul.f32 %v1626_v43, %v1232_v1  ;;  %v1066_v49 = vpop.f32.mrf.mxu0  ;;  %v1234_v35 = vcombine.high %v1144_v52, %v1144_v52  ;;  %v1241_v50 = vrot.slane %v1144_v52, %v4403_v17  ;;  %v1132_v54 = vadd.f32 %v4885_v53, %v1112_v37 }
 0x106   : > { %v1113_v9 = vmul.f32 %v4862_v42, %v1066_v49  ;;  %v5093_v63 = vmul.f32 %v1640_v45, %v1233_v34  ;;  %v2310_v36 = vcombine.low %v5014_v32, %v2032_v57  ;;  %v2035_v49 = vsel %vm4992_vm7, %v2033_v11, %v2034_v44 }
 0x107   : > { %v4093_v0 = vpop.f32.mrf.mxu0  ;;  %v5099_v1 = vrot.slane %v1234_v35, %v4403_v17  ;;  %v1249_v52 = vcombine.high %v1241_v50, %v1241_v50  ;;  %v5104_v15 = vmul.f32 %v1647_v46, %v1241_v50  ;;  %v1145_v37 = vmax.f32 %v1132_v54, 0.0 }
 0x108   : > { %v1133_v34 = vadd.f32 %v4885_v53, %v1113_v9  ;;  %v2036_v0 = vrot.slane %v2034_v44, 2  ;;  %v6219_v46 = vrot.slane %v4801_v2, %v4827_v27  ;;  %v6220_v44 = vrot.slane %v5009_v12, 7 }
 0x109   : > { %v1071_v43 = vpop.f32.mrf.mxu0  ;;  %v5115_v57 = vmul.f32 %v1654_v48, %v1249_v52  ;;  %v1251_v54 = vcombine.high %v1145_v37, %v1145_v37  ;;  %v1258_v11 = vrot.slane %v1145_v37, %v4403_v17  ;;  %v2318_v52 = vrot.slane %v2310_v36, %v4403_v17 }
 0x10a   : > { %v5121_v35 = vmul.f32 %v6219_v46, %v5099_v1  ;;  %v1146_v9 = vmax.f32 %v1133_v34, 0.0  ;;  %v2038_v45 = vsel %vm4992_vm7, %v2036_v0, %v6220_v44  ;;  %v2166_v2 = vcombine.low %v4958_v14, %v4977_v18 }
 0x10b   : > { %v4096_v32 = vpop.f32.mrf.mxu0  ;;  %v2311_v48 = vcombine.low %v2035_v49, %v2038_v45  ;;  %v2167_v46 = vcombine.low %v4982_v22, %v4999_v31  ;;  %v1265_v50 = vrot.slane %v1251_v54, %v4403_v17  ;;  %v1266_v40 = vcombine.high %v1258_v11, %v1258_v11 }
 0x10c   : > { %v6221_v37 = vrot.slane %v4805_v4, %v4818_v24  ;;  %v1268_v34 = vcombine.high %v1146_v9, %v1146_v9  ;;  %v1275_v45 = vrot.slane %v1146_v9, %v4403_v17  ;;  %v2174_v14 = vrot.slane %v2166_v2, %v4403_v17 }
 0x10d   : > { %v5140_v0 = vpop.f32.mrf.mxu0  ;;  %v2325_v36 = vrot.slane %v2311_v48, %v4403_v17  ;;  %v2181_v49 = vrot.slane %v2167_v46, %v4403_v17  ;;  %v1267_v31 = vcombine.high %v1265_v50, %v1265_v50  ;;  %v6222_v32 = vrot.slane %v4805_v4, %v4821_v25 }
 0x10e   : > { %v5138_v12 = vmul.f32 %v6221_v37, %v1258_v11  ;;  %v6223_v11 = vrot.slane %v4805_v4, %v4824_v26  ;;  %v1282_v48 = vrot.slane %v1268_v34, %v4403_v17  ;;  %v1283_v39 = vcombine.high %v1275_v45, %v1275_v45  ;;  %v2753_v34 = vld [vmem:[%s6198_s5 + $0x178] sm:$0xff] }
 0x10f   : > { %v5149_v54 = vmul.f32 %v6222_v32, %v1266_v40  ;;  %v4099_v9 = vpop.f32.mrf.mxu0  ;;  %v6224_v2 = vrot.slane %v4807_v5, %v4818_v24  ;;  %v2326_v38 = vcombine.low %v2318_v52, %v2325_v36  ;;  %v6225_v40 = vrot.slane %v4805_v4, %v4827_v27 }
 0x110   : > { %v5154_v44 = vmul.f32 %v6223_v11, %v1265_v50  ;;  %v2182_v60 = vcombine.low %v2174_v14, %v2181_v49  ;;  %v2471_v50 = vcombine.low %v5025_v61, %v5034_v10  ;;  %v2472_v11 = vcombine.low %v5047_v59, %v5054_v29 }
 0x111   : > { %v5161_v46 = vmul.f32 %v6224_v2, %v1275_v45  ;;  %v5166_v32 = vmul.f32 %v6225_v40, %v1267_v31  ;;  %v5175_v5 = vpop.f32.mrf.mxu0  ;;  %v1284_v45 = vcombine.high %v1282_v48, %v1282_v48  ;;  %v6226_v52 = vrot.slane %v4809_v6, %v4818_v24  ;;  %2914 = vmatprep.mubr.f32.mxu1 %v2326_v38  ;;  %v2768_v31 = vld [vmem:[%s6198_s5 + $0x1f0] sm:$0xff] }
 0x112   : > { %v6227_v36 = vrot.slane %v4809_v6, %v4821_v25  ;;  %2915 = vmatmul.mubr.f32.vlgmr.msra.gmra.mxu1 %v2182_v60  ;;  %v2479_v9 = vrot.slane %v2471_v50, %v4403_v17  ;;  %v2486_v2 = vrot.slane %v2472_v11, %v4403_v17  ;;  %v2041_v40 = vrot.slane %v5025_v61, 7 }
 0x113   : > { %v5180_v4 = vmul.f32 %v6226_v52, %v1283_v39  ;;  %v1114_v39 = vmul.f32 %v4862_v42, %v1071_v43  ;;  %v4102_v52 = vpop.f32.mrf.mxu0  ;;  %v6228_v38 = vrot.slane %v4809_v6, %v4824_v26  ;;  %v2044_v50 = vrot.slane %v5034_v10, 7  ;;  %3826 = vmatpush3.msra.mxu1 %v2753_v34  ;;  %v2767_v43 = vld [vmem:[%s6198_s5 + $0x1e8] sm:$0xff] }
 0x114   : > { %v5185_v14 = vmul.f32 %v6227_v36, %v1282_v48  ;;  %v2752_v48 = vld [vmem:[%s6198_s5 + $0x170] sm:$0xff]  ;;  %v6229_v11 = vrot.slane %v5047_v59, 7  ;;  %v5210_v37 = vcombine.low %v2479_v9, %v2486_v2  ;;  %3827 = vmatprep.subr.mxu1 %v2768_v31  ;;  %v6232_v22 = vrot.slane %v5054_v29, 7  ;;  %v2766_v31 = vld [vmem:[%s6198_s5 + $0x1e0] sm:$0xff] }
 0x115   : > { %v5201_v36 = vmul.f32 %v6228_v38, %v1284_v45  ;;  %v1134_v52 = vadd.f32 %v4885_v53, %v1114_v39  ;;  %v2042_v45 = vsel %vm4992_vm7, %v6231_v51, %v2041_v40  ;;  %v2043_v38 = vrot.slane %v2041_v40, 2  ;;  %v5220_v34 = vpop.f32.mrf.mxu0  ;;  %3828 = vmatpush3.msra.mxu1 %v2752_v48 }
 0x116   : > { %v2049_v49 = vrot.slane %v6229_v11, 2  ;;  %6230 = vst [vmem:[#allocation5_spill] sm:$0xff] %v5210_v37  ;;  %v2751_v11 = vld [vmem:[%s6198_s5 + $0x168] sm:$0xff]  ;;  %v2046_v60 = vrot.slane %v2044_v50, 2  ;;  %v2183_v2 = vcombine.low %v5020_v56, %v5025_v61  ;;  %v2184_v51 = vcombine.low %v5034_v10, %v5047_v59  ;;  %3124 = vmatprep.mubr.f32.mxu0 %v5210_v37  ;;  %3829 = vmatprep.subr.mxu1 %v2767_v43  ;;  %v2750_v61 = vld [vmem:[%s6198_s5 + $0x160] sm:$0xff]  ;;  %v2765_v43 = vld [vmem:[%s6198_s5 + $0x1d8] sm:$0xff] }
 0x117   : > { %v1147_v39 = vmax.f32 %v1134_v52, 0.0  ;;  %v2045_v29 = vsel %vm4992_vm7, %v2043_v38, %v2044_v50  ;;  %v2489_v56 = vcombine.low %v5079_v55, %v5084_v41  ;;  %v4105_v10 = vpop.f32.mrf.mxu0  ;;  %3830 = vmatpush3.msra.mxu1 %v2751_v11 }
 0x118   : > { %v2051_v9 = vsel %vm4992_vm7, %v2049_v49, %v6232_v22  ;;  %v2488_v22 = vcombine.low %v5071_v62, %v5066_v7  ;;  %v6233_v49 = vrot.slane %v5047_v59, 7  ;;  %v2327_v48 = vcombine.low %v2042_v45, %v2045_v29  ;;  %3831 = vmatprep.subr.mxu1 %v2766_v31  ;;  %v2749_v59 = vld [vmem:[%s6198_s5 + $0x158] sm:$0xff] }
 0x119   : > { %v2191_v50 = vrot.slane %v2183_v2, %v4403_v17  ;;  %v2198_v52 = vrot.slane %v2184_v51, %v4403_v17  ;;  %v1285_v38 = vcombine.high %v1147_v39, %v1147_v39  ;;  %v1292_v37 = vrot.slane %v1147_v39, %v4403_v17  ;;  %3832 = vmatpush3.msra.mxu1 %v2750_v61 }
 0x11a   : > { %v2048_v40 = vsel %vm4992_vm7, %v2046_v60, %v6233_v49  ;;  %v2496_v10 = vrot.slane %v2488_v22, %v4403_v17  ;;  %v5257_v60 = vpop.f32.mrf.mxu0  ;;  %v2335_v45 = vrot.slane %v2327_v48, %v4403_v17  ;;  %v2503_v2 = vrot.slane %v2489_v56, %v4403_v17  ;;  %3833 = vmatprep.subr.mxu1 %v2765_v43 }
 0x11b   : > { %v2328_v18 = vcombine.low %v2048_v40, %v2051_v9  ;;  %v5260_v11 = vcombine.low %v2191_v50, %v2198_v52  ;;  %v1115_v51 = vmul.f32 %v4862_v42, %v5140_v0  ;;  %v2764_v9 = vld [vmem:[%s6198_s5 + $0x1d0] sm:$0xff]  ;;  %v1299_v31 = vrot.slane %v1285_v38, %v4403_v17  ;;  %3834 = vmatpush3.msra.mxu1 %v2749_v59 }
 0x11c   : > { %v1300_v39 = vcombine.high %v1292_v37, %v1292_v37  ;;  %v6234_v29 = vrot.slane %v4809_v6, %v4827_v27  ;;  %v2748_v0 = vld [vmem:[%s6198_s5 + $0x150] sm:$0xff]  ;;  %v4108_v56 = vpop.f32.mrf.mxu0  ;;  %v5278_v61 = vcombine.low %v2496_v10, %v2503_v2  ;;  %v1116_v48 = vmul.f32 %v4862_v42, %v5175_v5  ;;  %v2763_v6 = vld [vmem:[%s6198_s5 + $0x1c8] sm:$0xff]  ;;  %3835 = vmatprep.subr.mxu1 %v2764_v9 }
 0x11d   : > { %v2342_v49 = vrot.slane %v2328_v18, %v4403_v17  ;;  %v1135_v40 = vadd.f32 %v4885_v53, %v1115_v51  ;;  %v2054_v50 = vrot.slane %v5071_v62, 7  ;;  %v1301_v18 = vcombine.high %v1299_v31, %v1299_v31  ;;  %3836 = vmatpush3.msra.mxu1 %v2748_v0 }
 0x11e   : > { %v5272_v22 = vmul.f32 %v6234_v29, %v1292_v37  ;;  %v6235_v37 = vrot.slane %v4811_v16, %v4818_v24  ;;  %v6236_v43 = vrot.slane %v4813_v19, %v4818_v24  ;;  %v5298_v10 = vpop.f32.mrf.mxu0  ;;  %v1136_v51 = vadd.f32 %v4885_v53, %v1116_v48  ;;  %3837 = vmatprep.subr.mxu1 %v2763_v6 }
 0x11f   : > { %v2343_v59 = vcombine.low %v2335_v45, %v2342_v49  ;;  %v1148_v2 = vmax.f32 %v1135_v40, 0.0  ;;  %v6237_v29 = vrot.slane %v5059_v20, 9  ;;  %v6239_v0 = vrot.slane %v5066_v7, 7 }
 0x120   : > { %v5290_v52 = vmul.f32 %v6235_v37, %v1300_v39  ;;  %v5295_v38 = vmul.f32 %v6236_v43, %v1299_v31  ;;  %v6238_v39 = vrot.slane %v4813_v19, %v4821_v25  ;;  %v2056_v37 = vrot.slane %v2054_v50, 2  ;;  %v4111_v45 = vpop.f32.mrf.mxu0 }
 0x121   : > { %v2055_v16 = vsel %vm4992_vm7, %v6237_v29, %v2054_v50  ;;  %2919 = vmatprep.mubr.f32.mxu1 %v2343_v59  ;;  %3125 = vmatmul.mubr.f32.vlgmr.msra.gmra.mxu0 %v2343_v59  ;;  %v1302_v49 = vcombine.high %v1148_v2, %v1148_v2  ;;  %v1309_v40 = vrot.slane %v1148_v2, %v4403_v17  ;;  %v1149_v48 = vmax.f32 %v1136_v51, 0.0  ;;  %v2747_v29 = vld [vmem:[%s6198_s5 + $0x148] sm:$0xff] }
 0x122   : > { %v5308_v31 = vmul.f32 %v6238_v39, %v1301_v18  ;;  %v2059_v43 = vrot.slane %v6239_v0, 2  ;;  %v2848_v18 = vld [vmem:[%s6198_s5 + $0x470] sm:$0xff]  ;;  %2920 = vmatmul.mubr.f32.gmra.mxu1 %v5260_v11  ;;  %3129 = vmatprep.mubr.f32.mxu0 %v5278_v61  ;;  %v6240_v50 = vmov %v6239_v0  ;;  %v2060_v59 = vrot.slane %v5079_v55, 7  ;;  %v2762_v39 = vld [vmem:[%s6198_s5 + $0x1c0] sm:$0xff] }
 0x123   : > { %v2058_v6 = vsel %vm4992_vm7, %v2056_v37, %v6240_v50  ;;  %v2200_v2 = vcombine.low %v5059_v20, %v5071_v62  ;;  %v2201_v51 = vcombine.low %v5066_v7, %v5079_v55  ;;  %v1316_v45 = vrot.slane %v1302_v49, %v4403_v17  ;;  %4113 = vmatpush3.msra.mxu0 %v4786_v58  ;;  %v2847_v20 = vld [vmem:[%s6198_s5 + $0x468] sm:$0xff] }
 0x124   : > { %v1317_v0 = vcombine.high %v1309_v40, %v1309_v40  ;;  %v6241_v9 = vrot.slane %v4813_v19, %v4824_v26  ;;  %v1319_v37 = vcombine.high %v1149_v48, %v1149_v48  ;;  %v1326_v7 = vrot.slane %v1149_v48, %v4403_v17  ;;  %4114 = vmatprep.subr.mxu0 %v2848_v18 }
 0x125   : > { %v2061_v62 = vsel %vm4992_vm7, %v2059_v43, %v2060_v59  ;;  %v2062_v55 = vrot.slane %v2060_v59, 2  ;;  %v2344_v49 = vcombine.low %v2055_v16, %v2058_v6  ;;  %3838 = vmatpush3.msra.mxu1 %v2747_v29  ;;  %v6242_v58 = vrot.slane %v4813_v19, %v4827_v27  ;;  %4115 = vmatpush3.msra.mxu0 %v2848_v18  ;;  %v2846_v16 = vld [vmem:[%s6198_s5 + $0x460] sm:$0xff]  ;;  %v2761_v29 = vld [vmem:[%s6198_s5 + $0x1b8] sm:$0xff] }
 0x126   : > { %v5339_v56 = vmul.f32 %v6241_v9, %v1309_v40  ;;  %v2746_v9 = vld [vmem:[%s6198_s5 + $0x140] sm:$0xff]  ;;  %v1318_v40 = vcombine.high %v1316_v45, %v1316_v45  ;;  %v6243_v48 = vrot.slane %v4815_v23, %v4818_v24  ;;  %3839 = vmatprep.subr.mxu1 %v2762_v39  ;;  %v5369_v19 = vrot.slane %v1319_v37, %v4403_v17  ;;  %v2745_v39 = vld [vmem:[%s6198_s5 + $0x138] sm:$0xff] }
 0x127   : > { %v5354_v50 = vmul.f32 %v6242_v58, %v1317_v0  ;;  %v1334_v6 = vcombine.high %v1326_v7, %v1326_v7  ;;  %v6244_v23 = vrot.slane %v4829_v28, %v4821_v25  ;;  %v6245_v18 = vrot.slane %v5084_v41, 7  ;;  %4116 = vmatprep.subr.mxu0 %v2847_v20  ;;  %v2845_v41 = vld [vmem:[%s6198_s5 + $0x458] sm:$0xff]  ;;  %3840 = vmatpush3.msra.mxu1 %v2746_v9 }
 0x128   : > { %v5359_v5 = vmul.f32 %v6243_v48, %v1316_v45  ;;  %v6246_v0 = vrot.slane %v4829_v28, %v4818_v24  ;;  %4117 = vmatpush3.msra.mxu0 %v2847_v20  ;;  %3841 = vmatprep.subr.mxu1 %v2761_v29  ;;  %v2744_v29 = vld [vmem:[%s6198_s5 + $0x130] sm:$0xff] }
 0x129   : > { %v5374_v59 = vmul.f32 %v6244_v23, %v1326_v7  ;;  %v2064_v45 = vsel %vm4992_vm7, %v2062_v55, %v6245_v18  ;;  %v2352_v7 = vrot.slane %v2344_v49, %v4403_v17  ;;  %v6247_v23 = vrot.slane %v4829_v28, %v4824_v26  ;;  %4118 = vmatprep.subr.mxu0 %v2846_v16  ;;  %v2760_v49 = vld [vmem:[%s6198_s5 + $0x1b0] sm:$0xff] }
 0x12a   : > { %v5386_v37 = vmul.f32 %v6246_v0, %v1318_v40  ;;  %v2345_v48 = vcombine.low %v2061_v62, %v2064_v45  ;;  %v6248_v62 = vrot.slane %v4829_v28, %v4827_v27  ;;  %v2215_v0 = vrot.slane %v2201_v51, %v4403_v17  ;;  %4119 = vmatpush3.msra.mxu0 %v2846_v16  ;;  %v2844_v28 = vld [vmem:[%s6198_s5 + $0x450] sm:$0xff] }
 0x12b   : > { %v5398_v18 = vmul.f32 %v6247_v23, %v1334_v6  ;;  %v2208_v6 = vrot.slane %v2200_v2, %v4403_v17  ;;  %3842 = vmatpush3.msra.mxu1 %v2745_v39  ;;  %v6249_v23 = vcombine.high %v5099_v1, %v5099_v1  ;;  %v2505_v2 = vcombine.low %v5104_v15, %v5115_v57 }
 0x12c   : > { %v5404_v40 = vmul.f32 %v6248_v62, %v5369_v19  ;;  %v2359_v45 = vrot.slane %v2345_v48, %v4403_v17  ;;  %v6250_v48 = vrot.slane %v4803_v3, %v4818_v24  ;;  %v1117_v51 = vmul.f32 %v4862_v42, %v5220_v34  ;;  %4120 = vmatprep.subr.mxu0 %v2845_v41 }
 0x12d   : > { %v6251_v16 = vrot.slane %v5104_v15, 7  ;;  %v6252_v39 = vrot.slane %v5093_v63, 9  ;;  %v5438_v1 = vcombine.low %v2208_v6, %v2215_v0  ;;  %4121 = vmatpush3.msra.mxu0 %v2845_v41  ;;  %3843 = vmatprep.subr.mxu1 %v2760_v49  ;;  %v2513_v55 = vrot.slane %v2505_v2, %v4403_v17 }
 0x12e   : > { %v1948_v62 = vmul.f32 %v6250_v48, %v6249_v23  ;;  %v5436_v20 = vcombine.low %v2352_v7, %v2359_v45  ;;  %v2070_v48 = vrot.slane %v5115_v57, 7  ;;  %v1137_v43 = vadd.f32 %v4885_v53, %v1117_v51  ;;  %4122 = vmatprep.subr.mxu0 %v2844_v28  ;;  %v2843_v7 = vld [vmem:[%s6198_s5 + $0x448] sm:$0xff]  ;;  %3844 = vmatpush3.msra.mxu1 %v2744_v29 }
 0x12f   : > { %v2068_v9 = vsel %vm4992_vm7, %v6252_v39, %v6251_v16  ;;  %v6253_v3 = vmov %v6251_v16  ;;  %v2759_v45 = vld [vmem:[%s6198_s5 + $0x1a8] sm:$0xff]  ;;  %v2073_v6 = vrot.slane %v5121_v35, 7  ;;  %v2217_v0 = vcombine.low %v5093_v63, %v5104_v15  ;;  %4123 = vmatpush3.msra.mxu0 %v2844_v28  ;;  %v2842_v16 = vld [vmem:[%s6198_s5 + $0x440] sm:$0xff] }
 0x130   : > { %v2069_v23 = vrot.slane %v6253_v3, 2  ;;  %v2076_v34 = vrot.slane %v1948_v62, 7  ;;  %v2506_v58 = vcombine.low %v5121_v35, %v1948_v62  ;;  %2924 = vmatprep.mubr.f32.mxu1 %v5436_v20  ;;  %3130 = vmatmul.mubr.f32.gmra.mxu0 %v5436_v20  ;;  %v2072_v49 = vrot.slane %v2070_v48, 2 }
 0x131   : > { %2925 = vmatmul.mubr.f32.gmra.mxu1 %v5438_v1  ;;  %v1150_v62 = vmax.f32 %v1137_v43, 0.0  ;;  %v2218_v51 = vcombine.low %v5115_v57, %v5121_v35  ;;  %v2075_v3 = vrot.slane %v2073_v6, 2  ;;  %v2225_v63 = vrot.slane %v2217_v0, %v4403_v17  ;;  %4124 = vmatprep.subr.mxu0 %v2843_v7 }
 0x132   : > { %v2071_v41 = vsel %vm4992_vm7, %v2069_v23, %v2070_v48  ;;  %v2520_v29 = vrot.slane %v2506_v58, %v4403_v17  ;;  %v2074_v39 = vsel %vm4992_vm7, %v2072_v49, %v2073_v6  ;;  %v2522_v15 = vcombine.low %v5149_v54, %v5154_v44  ;;  %3845 = vmatprep.subr.mxu1 %v2759_v45  ;;  %v2758_v45 = vld [vmem:[%s6198_s5 + $0x1a0] sm:$0xff] }
 0x133   : > { %v2361_v2 = vcombine.low %v2068_v9, %v2071_v41  ;;  %v1336_v58 = vcombine.high %v1150_v62, %v1150_v62  ;;  %v1343_v57 = vrot.slane %v1150_v62, %v4403_v17  ;;  %4125 = vmatpush3.msra.mxu0 %v2843_v7  ;;  %v2743_v9 = vld [vmem:[%s6198_s5 + $0x128] sm:$0xff]  ;;  %v2077_v28 = vsel %vm4992_vm7, %v2075_v3, %v2076_v34  ;;  %v2841_v7 = vld [vmem:[%s6198_s5 + $0x438] sm:$0xff] }
 0x134   : > { %v5471_v43 = vcombine.low %v2513_v55, %v2520_v29  ;;  %v2232_v23 = vrot.slane %v2218_v51, %v4403_v17  ;;  %v2523_v48 = vcombine.low %v5166_v32, %v5161_v46  ;;  %v2530_v55 = vrot.slane %v2522_v15, %v4403_v17  ;;  %4126 = vmatprep.subr.mxu0 %v2842_v16  ;;  %v2742_v29 = vld [vmem:[%s6198_s5 + $0x120] sm:$0xff]  ;;  %v2757_v15 = vld [vmem:[%s6198_s5 + $0x198] sm:$0xff] }
 0x135   : > { %v2369_v35 = vrot.slane %v2361_v2, %v4403_v17  ;;  %v1350_v34 = vrot.slane %v1336_v58, %v4403_v17  ;;  %v1351_v41 = vcombine.high %v1343_v57, %v1343_v57  ;;  %v6254_v49 = vrot.slane %v4872_v47, %v4818_v24  ;;  %3846 = vmatpush3.msra.mxu1 %v2743_v9  ;;  %v2741_v9 = vld [vmem:[%s6198_s5 + $0x118] sm:$0xff] }
 0x136   : > { %3134 = vmatprep.mubr.f32.mxu0 %v5471_v43  ;;  %v2362_v0 = vcombine.low %v2074_v39, %v2077_v28  ;;  %v5500_v62 = vcombine.low %v2225_v63, %v2232_v23  ;;  %v2537_v2 = vrot.slane %v2523_v48, %v4403_v17  ;;  %v1118_v51 = vmul.f32 %v4862_v42, %v5257_v60 }
 0x137   : > { %v5495_v6 = vmul.f32 %v6254_v49, %v1343_v57  ;;  %v2080_v3 = vrot.slane %v5149_v54, 7  ;;  %4127 = vmatpush3.msra.mxu0 %v2842_v16  ;;  %v1352_v39 = vcombine.high %v1350_v34, %v1350_v34  ;;  %v6255_v58 = vrot.slane %v4872_v47, %v4821_v25  ;;  %3847 = vmatprep.subr.mxu1 %v2758_v45  ;;  %v2840_v16 = vld [vmem:[%s6198_s5 + $0x430] sm:$0xff] }
 0x138   : > { %v6256_v63 = vrot.slane %v4872_v47, %v4824_v26  ;;  %4128 = vmatprep.subr.mxu0 %v2841_v7  ;;  %v2376_v23 = vrot.slane %v2362_v0, %v4403_v17  ;;  %v5527_v48 = vcombine.low %v2530_v55, %v2537_v2  ;;  %3848 = vmatpush3.msra.mxu1 %v2742_v29  ;;  %v2756_v49 = vld [vmem:[%s6198_s5 + $0x190] sm:$0xff]  ;;  %v2083_v55 = vrot.slane %v5154_v44, 7 }
 0x139   : > { %v5512_v57 = vmul.f32 %v6255_v58, %v1351_v41  ;;  %v1138_v41 = vadd.f32 %v4885_v53, %v1118_v51  ;;  %v6258_v58 = vrot.slane %v4872_v47, %v4827_v27  ;;  %v2082_v0 = vrot.slane %v2080_v3, 2  ;;  %4129 = vmatpush3.msra.mxu0 %v2841_v7  ;;  %3849 = vmatprep.subr.mxu1 %v2757_v15  ;;  %v2740_v15 = vld [vmem:[%s6198_s5 + $0x110] sm:$0xff] }
 0x13a   : > { %v5517_v28 = vmul.f32 %v6256_v63, %v1350_v34  ;;  %v6257_v34 = vrot.slane %v5138_v12, 9  ;;  %v2086_v2 = vrot.slane %v5166_v32, 7  ;;  %v5544_v51 = vcombine.low %v2369_v35, %v2376_v23  ;;  %4130 = vmatprep.subr.mxu0 %v2840_v16  ;;  %3850 = vmatpush3.msra.mxu1 %v2741_v9  ;;  %v2839_v35 = vld [vmem:[%s6198_s5 + $0x428] sm:$0xff] }
 0x13b   : > { %v5540_v63 = vmul.f32 %v6258_v58, %v1352_v39  ;;  %v2234_v29 = vcombine.low %v5138_v12, %v5149_v54  ;;  %v2235_v60 = vcombine.low %v5154_v44, %v5166_v32  ;;  %v2084_v47 = vsel %vm4992_vm7, %v2082_v0, %v2083_v55  ;;  %4131 = vmatpush3.msra.mxu0 %v2840_v16 }
 0x13c   : > { %v2081_v45 = vsel %vm4992_vm7, %v6257_v34, %v2080_v3  ;;  %v1151_v34 = vmax.f32 %v1138_v41, 0.0  ;;  %v2085_v3 = vrot.slane %v2083_v55, 2  ;;  %v2088_v39 = vrot.slane %v2086_v2, 2  ;;  %3851 = vmatprep.subr.mxu1 %v2756_v49  ;;  %2929 = vmatprep.mubr.f32.mxu1 %v5544_v51  ;;  %v2755_v49 = vld [vmem:[%s6198_s5 + $0x188] sm:$0xff] }
 0x13d   : > { %v2539_v7 = vcombine.low %v5185_v14, %v5201_v36  ;;  %3135 = vmatmul.mubr.f32.gmra.mxu0 %v5544_v51  ;;  %v2378_v44 = vcombine.low %v2081_v45, %v2084_v47  ;;  %v2093_v32 = vrot.slane %v5185_v14, 7  ;;  %2930 = vmatmul.mubr.f32.gmra.mxu1 %v5500_v62  ;;  %v6259_v9 = vrot.slane %v5161_v46, 7 }
 0x13e   : > { %v1353_v12 = vcombine.high %v1151_v34, %v1151_v34  ;;  %v1360_v54 = vrot.slane %v1151_v34, %v4403_v17  ;;  %3139 = vmatprep.mubr.f32.mxu0 %v5527_v48  ;;  %v2087_v16 = vsel %vm4992_vm7, %v2085_v3, %v2086_v2  ;;  %v2242_v41 = vrot.slane %v2234_v29, %v4403_v17  ;;  %v2838_v34 = vld [vmem:[%s6198_s5 + $0x420] sm:$0xff] }
 0x13f   : > { %v2090_v23 = vsel %vm4992_vm7, %v2088_v39, %v6259_v9  ;;  %v2096_v45 = vrot.slane %v5201_v36, 7  ;;  %v6260_v55 = vrot.slane %v4902_v13, %v4818_v24  ;;  %4132 = vmatprep.subr.mxu0 %v2839_v35  ;;  %v2386_v29 = vrot.slane %v2378_v44, %v4403_v17  ;;  %3852 = vmatpush3.msra.mxu1 %v2740_v15  ;;  %v2739_v13 = vld [vmem:[%s6198_s5 + $0x108] sm:$0xff]  ;;  %v2837_v15 = vld [vmem:[%s6198_s5 + $0x418] sm:$0xff] }
 0x140   : > { %v1367_v58 = vrot.slane %v1353_v12, %v4403_v17  ;;  %v1368_v0 = vcombine.high %v1360_v54, %v1360_v54  ;;  %v2379_v46 = vcombine.low %v2087_v16, %v2090_v23  ;;  %v2249_v47 = vrot.slane %v2235_v60, %v4403_v17  ;;  %4133 = vmatpush3.msra.mxu0 %v2839_v35  ;;  %v2738_v35 = vld [vmem:[%s6198_s5 + $0x100] sm:$0xff] }
 0x141   : > { %v5581_v2 = vmul.f32 %v6260_v55, %v1360_v54  ;;  %v2540_v3 = vcombine.low %v5272_v22, %v5290_v52  ;;  %v2547_v39 = vrot.slane %v2539_v7, %v4403_v17  ;;  %v6261_v54 = vrot.slane %v4924_v21, %v4818_v24  ;;  %3853 = vmatprep.subr.mxu1 %v2755_v49  ;;  %v2754_v7 = vld [vmem:[%s6198_s5 + $0x180] sm:$0xff] }
 0x142   : > { %v1369_v12 = vcombine.high %v1367_v58, %v1367_v58  ;;  %v6262_v44 = vrot.slane %v4924_v21, %v4821_v25  ;;  %v2393_v23 = vrot.slane %v2379_v46, %v4403_v17  ;;  %4134 = vmatprep.subr.mxu0 %v2838_v34  ;;  %v6263_v49 = vrot.slane %v4924_v21, %v4824_v26 }
 0x143   : > { %v5597_v16 = vmul.f32 %v6261_v54, %v1368_v0  ;;  %v2146_v9 = vrot.slane %v5581_v2, 7  ;;  %v5612_v0 = vcombine.low %v2242_v41, %v2249_v47  ;;  %v2554_v25 = vrot.slane %v2540_v3, %v4403_v17  ;;  %3854 = vmatpush3.msra.mxu1 %v2739_v13  ;;  %4135 = vmatpush3.msra.mxu0 %v2838_v34 }
 0x144   : > { %v5602_v60 = vmul.f32 %v6262_v44, %v1367_v58  ;;  %v1119_v58 = vmul.f32 %v4862_v42, %v5298_v10  ;;  %v5623_v55 = vmul.f32 %v6263_v49, %v1369_v12  ;;  %v6264_v41 = vrot.slane %v5180_v4, 9  ;;  %3855 = vmatprep.subr.mxu1 %v2754_v7  ;;  %4136 = vmatprep.subr.mxu0 %v2837_v15 }
 0x145   : > { %v3732_v54 = vrot.slane %v5597_v16, 9  ;;  %v2095_v47 = vrot.slane %v2093_v32, 2  ;;  %v5630_v42 = vcombine.low %v2386_v29, %v2393_v23  ;;  %v5632_v10 = vcombine.low %v2547_v39, %v2554_v25  ;;  %3856 = vmatpush3.msra.mxu1 %v2738_v35  ;;  %4137 = vmatpush3.msra.mxu0 %v2837_v15 }
 0x146   : > { %v2094_v46 = vsel %vm4992_vm7, %v6264_v41, %v2093_v32  ;;  %v1139_v3 = vadd.f32 %v4885_v53, %v1119_v58  ;;  %v2098_v44 = vrot.slane %v2096_v45, 2  ;;  %v6265_v12 = vrot.slane %v5272_v22, 7  ;;  %v2833_v53 = vld [vmem:[%s6198_s5 + $0x3f8] sm:$0xff] }
 0x147   : > { %v2097_v26 = vsel %vm4992_vm7, %v2095_v47, %v2096_v45  ;;  %v2251_v32 = vcombine.low %v5180_v4, %v5185_v14  ;;  %v2252_v34 = vcombine.low %v5201_v36, %v5272_v22  ;;  %2934 = vmatprep.mubr.f32.mxu1 %v5630_v42  ;;  %3140 = vmatmul.mubr.f32.gmra.mxu0 %v5630_v42  ;;  %v2836_v36 = vld [vmem:[%s6198_s5 + $0x410] sm:$0xff]  ;;  %v6267_v13 = vrot.slane %v5290_v52, 7  ;;  %v2835_v52 = vld [vmem:[%s6198_s5 + $0x408] sm:$0xff] }
 0x148   : > { %v2101_v49 = vrot.slane %v6265_v12, 2  ;;  %v1152_v45 = vmax.f32 %v1139_v3, 0.0  ;;  %v6266_v29 = vmov %v6265_v12  ;;  %v2395_v4 = vcombine.low %v2094_v46, %v2097_v26  ;;  %2935 = vmatmul.mubr.f32.gmra.mxu1 %v5612_v0  ;;  %3144 = vmatprep.mubr.f32.mxu0 %v5632_v10 }
 0x149   : > { %v2100_v39 = vsel %vm4992_vm7, %v2098_v44, %v6266_v29  ;;  %v2556_v14 = vcombine.low %v5308_v31, %v5339_v56  ;;  %v2259_v7 = vrot.slane %v2251_v32, %v4403_v17  ;;  %v2266_v15 = vrot.slane %v2252_v34, %v4403_v17  ;;  %3937 = vmatprep.subr.mxu1 %v2833_v53 }
 0x14a   : > { %v2103_v22 = vsel %vm4992_vm7, %v2101_v49, %v6267_v13  ;;  %v2106_v23 = vrot.slane %v5308_v31, 7  ;;  %v1376_v25 = vrot.slane %v1152_v45, %v4403_v17  ;;  %v2403_v35 = vrot.slane %v2395_v4, %v4403_v17  ;;  %4138 = vmatprep.subr.mxu0 %v2836_v36  ;;  %v2834_v45 = vld [vmem:[%s6198_s5 + $0x400] sm:$0xff] }
 0x14b   : > { %v2396_v58 = vcombine.low %v2100_v39, %v2103_v22  ;;  %v2557_v41 = vcombine.low %v5354_v50, %v5359_v5  ;;  %v5673_v46 = vcombine.low %v2259_v7, %v2266_v15  ;;  %v2564_v47 = vrot.slane %v2556_v14, %v4403_v17  ;;  %4139 = vmatpush3.msra.mxu0 %v2836_v36 }
 0x14c   : > { %v6268_v3 = vrot.slane %v5295_v38, 9  ;;  %v2108_v26 = vrot.slane %v2106_v23, 2  ;;  %v1377_v12 = vcombine.high %v1376_v25, %v1376_v25  ;;  %v6269_v49 = vrot.slane %v4924_v21, %v4827_v27  ;;  %4140 = vmatprep.subr.mxu0 %v2835_v52 }
 0x14d   : > { %v2410_v34 = vrot.slane %v2396_v58, %v4403_v17  ;;  %v2571_v53 = vrot.slane %v2557_v41, %v4403_v17  ;;  %v6270_v29 = vrot.slane %v5339_v56, 7  ;;  %v2112_v27 = vrot.slane %v5354_v50, 7  ;;  %4141 = vmatpush3.msra.mxu0 %v2835_v52 }
 0x14e   : > { %v2107_v44 = vsel %vm4992_vm7, %v6268_v3, %v2106_v23  ;;  %v5683_v32 = vmul.f32 %v6269_v49, %v1376_v25  ;;  %v2268_v21 = vcombine.low %v5295_v38, %v5308_v31  ;;  %v6272_v36 = vrot.slane %v4952_v8, %v4818_v24  ;;  %4142 = vmatprep.subr.mxu0 %v2834_v45 }
 0x14f   : > { %v2110_v39 = vsel %vm4992_vm7, %v2108_v26, %v6270_v29  ;;  %v6271_v4 = vmov %v6270_v29  ;;  %v5705_v7 = vcombine.low %v2403_v35, %v2410_v34  ;;  %v5707_v15 = vcombine.low %v2564_v47, %v2571_v53  ;;  %4143 = vmatpush3.msra.mxu0 %v2834_v45 }
 0x150   : > { %v2111_v14 = vrot.slane %v6271_v4, 2  ;;  %v5702_v13 = vmul.f32 %v6272_v36, %v1377_v12  ;;  %v2161_v22 = vrot.slane %v5683_v32, 7  ;;  %v2114_v25 = vrot.slane %v2112_v27, 2 }
 0x151   : > { %v2412_v58 = vcombine.low %v2107_v44, %v2110_v39  ;;  %v2269_v38 = vcombine.low %v5339_v56, %v5354_v50  ;;  %2939 = vmatprep.mubr.f32.mxu1 %v5705_v7  ;;  %3145 = vmatmul.mubr.f32.gmra.mxu0 %v5705_v7  ;;  %v2276_v31 = vrot.slane %v2268_v21, %v4403_v17  ;;  %v6275_v56 = vrot.slane %v5359_v5, 7 }
 0x152   : > { %v2113_v23 = vsel %vm4992_vm7, %v2111_v14, %v2112_v27  ;;  %v2164_v8 = vrot.slane %v5702_v13, 7  ;;  %v6273_v35 = vcombine.high %v5369_v19, %v5369_v19  ;;  %v6274_v41 = vrot.slane %v4841_v33, %v4818_v24  ;;  %2940 = vmatmul.mubr.f32.gmra.mxu1 %v5673_v46  ;;  %3149 = vmatprep.mubr.f32.mxu0 %v5707_v15 }
 0x153   : > { %v2573_v47 = vcombine.low %v5374_v59, %v5398_v18  ;;  %v2116_v50 = vsel %vm4992_vm7, %v2114_v25, %v6275_v56  ;;  %v2420_v3 = vrot.slane %v2412_v58, %v4403_v17  ;;  %v2283_v19 = vrot.slane %v2269_v38, %v4403_v17 }
 0x154   : > { %v1968_v52 = vmul.f32 %v6274_v41, %v6273_v35  ;;  %v6276_v44 = vrot.slane %v5374_v59, 7  ;;  %v2413_v33 = vcombine.low %v2113_v23, %v2116_v50  ;;  %v6278_v53 = vrot.slane %v5386_v37, 9 }
 0x155   : > { %v2581_v49 = vrot.slane %v2573_v47, %v4403_v17  ;;  %v5737_v34 = vcombine.low %v2276_v31, %v2283_v19  ;;  %v2122_v39 = vrot.slane %v5398_v18, 7  ;;  %v2125_v4 = vrot.slane %v5404_v40, 7 }
 0x156   : > { %v2121_v24 = vrot.slane %v6276_v44, 2  ;;  %v2128_v26 = vrot.slane %v1968_v52, 7  ;;  %v2574_v12 = vcombine.low %v5404_v40, %v1968_v52  ;;  %v6277_v5 = vmov %v6276_v44  ;;  %v6279_v44 = vld [vmem:[#allocation2_spill] sm:$0xff] }
 0x157   : > { %v2120_v29 = vsel %vm4992_vm7, %v6278_v53, %v6277_v5  ;;  %v2427_v14 = vrot.slane %v2413_v33, %v4403_v17  ;;  %v2285_v45 = vcombine.low %v5386_v37, %v5374_v59  ;;  %v2286_v21 = vcombine.low %v5398_v18, %v5404_v40 }
 0x158   : > { %v2588_v27 = vrot.slane %v2574_v12, %v4403_v17  ;;  %v2123_v36 = vsel %vm4992_vm7, %v2121_v24, %v2122_v39  ;;  %v2124_v23 = vrot.slane %v2122_v39, 2  ;;  %v2127_v25 = vrot.slane %v2125_v4, 2  ;;  %v6280_v24 = vld [vmem:[#allocation3_spill] sm:$0xff] }
 0x159   : > { %v2634_v58 = vcombine.low %v5512_v57, %v5517_v28  ;;  %v5757_v38 = vcombine.low %v2420_v3, %v2427_v14  ;;  %v2429_v35 = vcombine.low %v2120_v29, %v2123_v36  ;;  %v2293_v41 = vrot.slane %v2285_v45, %v4403_v17  ;;  %v6283_v14 = vld [vmem:[#allocation4_spill] sm:$0xff] }
 0x15a   : > { %v5759_v31 = vcombine.low %v2581_v49, %v2588_v27  ;;  %v2126_v59 = vsel %vm4992_vm7, %v2124_v23, %v2125_v4  ;;  %v2129_v37 = vsel %vm4992_vm7, %v2127_v25, %v2128_v26  ;;  %v2300_v18 = vrot.slane %v2286_v21, %v4403_v17 }
 0x15b   : > { %v2635_v40 = vcombine.low %v5540_v63, %v5581_v2  ;;  %2944 = vmatprep.mubr.f32.mxu1 %v5757_v38  ;;  %3150 = vmatmul.mubr.f32.gmra.mxu0 %v5757_v38  ;;  %v2430_v52 = vcombine.low %v2126_v59, %v2129_v37  ;;  %v2437_v47 = vrot.slane %v2429_v35, %v4403_v17  ;;  %v2137_v50 = vrot.slane %v5512_v57, 7 }
 0x15c   : > { %v2642_v56 = vrot.slane %v2634_v58, %v4403_v17  ;;  %2945 = vmatmul.mubr.f32.gmra.mxu1 %v5737_v34  ;;  %3154 = vmatprep.mubr.f32.mxu0 %v5759_v31  ;;  %v5776_v3 = vcombine.low %v2293_v41, %v2300_v18  ;;  %v6281_v33 = vcombine.low %v6279_v44, %v6280_v24  ;;  %v2140_v12 = vrot.slane %v5517_v28, 7 }
 0x15d   : > { %v2649_v19 = vrot.slane %v2635_v40, %v4403_v17  ;;  %v2444_v49 = vrot.slane %v2430_v52, %v4403_v17  ;;  %v6282_v5 = vrot.slane %v5495_v6, 9  ;;  %v2139_v29 = vrot.slane %v2137_v50, 2 }
 0x15e   : > { %v2462_v26 = vrot.slane %v6281_v33, %v4403_v17  ;;  %v2143_v39 = vrot.slane %v5540_v63, 7  ;;  %v2142_v45 = vrot.slane %v2140_v12, 2  ;;  %v2688_v21 = vcombine.low %v5602_v60, %v5623_v55 }
 0x15f   : > { %v2138_v53 = vsel %vm4992_vm7, %v6282_v5, %v2137_v50  ;;  %v5790_v4 = vcombine.low %v2642_v56, %v2649_v19  ;;  %v5795_v36 = vcombine.low %v2437_v47, %v2444_v49  ;;  %v2141_v23 = vsel %vm4992_vm7, %v2139_v29, %v2140_v12  ;;  %v2817_v19 = vld [vmem:[%s6198_s5 + $0x378] sm:$0xff] }
 0x160   : > { %v2470_v27 = vcombine.low %v2462_v26, %v6283_v14  ;;  %v2145_v25 = vrot.slane %v2143_v39, 2  ;;  %v2689_v58 = vcombine.low %v5683_v32, %v5702_v13  ;;  %v2144_v35 = vsel %vm4992_vm7, %v2142_v45, %v2143_v39  ;;  %v2832_v26 = vld [vmem:[%s6198_s5 + $0x3f0] sm:$0xff]  ;;  %v2830_v13 = vld [vmem:[%s6198_s5 + $0x3e0] sm:$0xff]  ;;  %v6284_v45 = vld [vmem:[#allocation5_spill] sm:$0xff] }
 0x161   : > { %v2616_v41 = vcombine.low %v2138_v53, %v2141_v23  ;;  %v5804_v59 = vrot.slane %v2688_v21, %v4403_v17  ;;  %v2598_v37 = vcombine.low %v5495_v6, %v5512_v57  ;;  %2949 = vmatprep.mubr.f32.mxu1 %v5795_v36  ;;  %3155 = vmatmul.mubr.f32.gmra.mxu0 %v5795_v36  ;;  %v2155_v47 = vrot.slane %v5602_v60, 7  ;;  %v2816_v53 = vld [vmem:[%s6198_s5 + $0x370] sm:$0xff]  ;;  %v2814_v21 = vld [vmem:[%s6198_s5 + $0x360] sm:$0xff]  ;;  %v2829_v23 = vld [vmem:[%s6198_s5 + $0x3d8] sm:$0xff] }
 0x162   : > { %v2147_v18 = vsel %vm4992_vm7, %v2145_v25, %v2146_v9  ;;  %v5815_v40 = vrot.slane %v2689_v58, %v4403_v17  ;;  %v2599_v52 = vcombine.low %v5517_v28, %v5540_v63  ;;  %2950 = vmatmul.mubr.f32.gmra.mxu1 %v5776_v3  ;;  %3159 = vmatprep.mubr.f32.mxu0 %v5790_v4  ;;  %v2158_v56 = vrot.slane %v5623_v55, 7  ;;  %v2813_v25 = vld [vmem:[%s6198_s5 + $0x358] sm:$0xff]  ;;  %v2828_v58 = vld [vmem:[%s6198_s5 + $0x3d0] sm:$0xff] }
 0x163   : > { %v2617_v6 = vcombine.low %v2144_v35, %v2147_v18  ;;  %v2624_v57 = vrot.slane %v2616_v41, %v4403_v17  ;;  %v2606_v2 = vrot.slane %v2598_v37, %v4403_v17  ;;  %3019 = vmatprep.mubr.f32.mxu1 %v5260_v11  ;;  %v2156_v63 = vsel %vm4992_vm7, %v3732_v54, %v2155_v47  ;;  %v2812_v35 = vld [vmem:[%s6198_s5 + $0x350] sm:$0xff]  ;;  %v2827_v41 = vld [vmem:[%s6198_s5 + $0x3c8] sm:$0xff]  ;;  %v2810_v18 = vld [vmem:[%s6198_s5 + $0x340] sm:$0xff] }
 0x164   : > { %v2704_v9 = vcombine.low %v5804_v59, %v5815_v40  ;;  %v2613_v28 = vrot.slane %v2599_v52, %v4403_v17  ;;  %v2157_v50 = vrot.slane %v2155_v47, 2  ;;  %v2160_v24 = vrot.slane %v2158_v56, 2  ;;  %v2811_v37 = vld [vmem:[%s6198_s5 + $0x348] sm:$0xff]  ;;  %v2825_v52 = vld [vmem:[%s6198_s5 + $0x3b8] sm:$0xff] }
 0x165   : > { %v2631_v44 = vrot.slane %v2617_v6, %v4403_v17  ;;  %v2163_v11 = vrot.slane %v2161_v22, 2  ;;  %v2652_v33 = vcombine.low %v5597_v16, %v5602_v60  ;;  %v2653_v49 = vcombine.low %v5623_v55, %v5683_v32  ;;  %v2831_v55 = vld [vmem:[%s6198_s5 + $0x3e8] sm:$0xff]  ;;  %v2809_v47 = vld [vmem:[%s6198_s5 + $0x338] sm:$0xff]  ;;  %v2808_v6 = vld [vmem:[%s6198_s5 + $0x330] sm:$0xff] }
 0x166   : > { %v5844_v12 = vcombine.low %v2606_v2, %v2613_v28  ;;  %v2159_v54 = vsel %vm4992_vm7, %v2157_v50, %v2158_v56  ;;  %3020 = vmatmul.mubr.f32.vlgmr.msra.gmra.mxu1 %v2470_v27  ;;  %v2162_v16 = vsel %vm4992_vm7, %v2160_v24, %v2161_v22  ;;  %v2806_v2 = vld [vmem:[%s6198_s5 + $0x320] sm:$0xff]  ;;  %v2821_v59 = vld [vmem:[%s6198_s5 + $0x398] sm:$0xff]  ;;  %v2804_v56 = vld [vmem:[%s6198_s5 + $0x310] sm:$0xff] }
 0x167   : > { %v5850_v5 = vcombine.low %v2624_v57, %v2631_v44  ;;  %v2165_v60 = vsel %vm4992_vm7, %v2163_v11, %v2164_v8  ;;  %v2670_v29 = vcombine.low %v2156_v63, %v2159_v54  ;;  %3938 = vmatpush3.msra.mxu1 %v2817_v19  ;;  %3024 = vmatprep.mubr.f32.mxu1 %v5438_v1  ;;  %v2823_v57 = vld [vmem:[%s6198_s5 + $0x3a8] sm:$0xff]  ;;  %v2805_v40 = vld [vmem:[%s6198_s5 + $0x318] sm:$0xff]  ;;  %v2802_v63 = vld [vmem:[%s6198_s5 + $0x300] sm:$0xff] }
 0x168   : > { %v2671_v39 = vcombine.low %v2162_v16, %v2165_v60  ;;  %v5868_v14 = vrot.slane %v2652_v33, %v4403_v17  ;;  %v5871_v32 = vrot.slane %v2653_v49, %v4403_v17  ;;  %3939 = vmatprep.subr.mxu1 %v2832_v26  ;;  %v2803_v28 = vld [vmem:[%s6198_s5 + $0x308] sm:$0xff]  ;;  %v3415_v50 = vld [vmem:[%s6201_s8 + $0x10] sm:$0xff]  ;;  %v3413_v44 = vld [vmem:[%s6201_s8] sm:$0xff] }
 0x169   : > { %3160 = vmatmul.mubr.f32.gmra.mxu0 %v5850_v5  ;;  %3940 = vmatpush3.msra.mxu1 %v2816_v53  ;;  %v5882_v22 = vrot.slane %v2670_v29, %v4403_v17  ;;  %v3414_v19 = vld [vmem:[%s6201_s8 + $0x8] sm:$0xff] }
 0x16a   : > { %4144 = vmatprep.mubr.f32.mxu0 %v5278_v61  ;;  %v5885_v8 = vrot.slane %v2671_v39, %v4403_v17  ;;  %v2668_v27 = vcombine.low %v5868_v14, %v5871_v32  ;;  %3941 = vmatprep.subr.mxu1 %v2831_v55 }
 0x16b   : > { %3025 = vmatmul.mubr.f32.gmra.mxu1 %v6284_v45 }
 0x16c   : > { %3942 = vmatpush3.msra.mxu1 %v2815_v30  ;;  %3029 = vmatprep.mubr.f32.mxu1 %v5500_v62  ;;  %v2686_v17 = vcombine.low %v5882_v22, %v5885_v8 }
 0x16d   : > { %3943 = vmatprep.subr.mxu1 %v2830_v13  ;;  %4145 = vmatmul.mubr.f32.vlgmr.msra.gmra.mxu0 %v5471_v43 }
 0x16e   : > { %3944 = vmatpush3.msra.mxu1 %v2814_v21  ;;  %4147 = vmatprep.mubr.f32.mxu0 %v5527_v48 }
 0x16f   : > { %3945 = vmatprep.subr.mxu1 %v2829_v23  ;;  %3030 = vmatmul.mubr.f32.gmra.mxu1 %v5278_v61  ;;  %v2826_v61 = vld [vmem:[%s6198_s5 + $0x3c0] sm:$0xff] }
 0x170   : > { %3946 = vmatpush3.msra.mxu1 %v2813_v25  ;;  %3034 = vmatprep.mubr.f32.mxu1 %v5612_v0 }
 0x171   : > { %3947 = vmatprep.subr.mxu1 %v2828_v58  ;;  %4148 = vmatmul.mubr.f32.gmra.mxu0 %v5632_v10 }
 0x172   : > { %3948 = vmatpush3.msra.mxu1 %v2812_v35  ;;  %4150 = vmatprep.mubr.f32.mxu0 %v5707_v15 }
 0x173   : > { %3949 = vmatprep.subr.mxu1 %v2827_v41  ;;  %3035 = vmatmul.mubr.f32.gmra.mxu1 %v5471_v43  ;;  %v2824_v43 = vld [vmem:[%s6198_s5 + $0x3b0] sm:$0xff] }
 0x174   : > { %3950 = vmatpush3.msra.mxu1 %v2811_v37  ;;  %3039 = vmatprep.mubr.f32.mxu1 %v5673_v46 }
 0x175   : > { %3951 = vmatprep.subr.mxu1 %v2826_v61  ;;  %4151 = vmatmul.mubr.f32.gmra.mxu0 %v5759_v31 }
 0x176   : > { %3952 = vmatpush3.msra.mxu1 %v2810_v18  ;;  %4153 = vmatprep.mubr.f32.mxu0 %v5790_v4  ;;  %v2822_v4 = vld [vmem:[%s6198_s5 + $0x3a0] sm:$0xff] }
 0x177   : > { %3953 = vmatprep.subr.mxu1 %v2825_v52  ;;  %3040 = vmatmul.mubr.f32.gmra.mxu1 %v5527_v48  ;;  %v2807_v48 = vld [vmem:[%s6198_s5 + $0x328] sm:$0xff] }
 0x178   : > { %3954 = vmatpush3.msra.mxu1 %v2809_v47  ;;  %3044 = vmatprep.mubr.f32.mxu1 %v5737_v34 }
 0x179   : > { %3955 = vmatprep.subr.mxu1 %v2824_v43  ;;  %4154 = vmatmul.mubr.f32.gmra.mxu0 %v2704_v9  ;;  %v2819_v9 = vld [vmem:[%s6198_s5 + $0x388] sm:$0xff] }
 0x17a   : > { %3956 = vmatpush3.msra.mxu1 %v2808_v6 }
 0x17b   : > { %3957 = vmatprep.subr.mxu1 %v2823_v57  ;;  %3045 = vmatmul.mubr.f32.gmra.mxu1 %v5632_v10  ;;  %v2820_v10 = vld [vmem:[%s6198_s5 + $0x390] sm:$0xff] }
 0x17c   : > { %3958 = vmatpush3.msra.mxu1 %v2807_v48  ;;  %3049 = vmatprep.mubr.f32.mxu1 %v5776_v3 }
 0x17d   : > { %3959 = vmatprep.subr.mxu1 %v2822_v4 }
 0x17e   : > { %3960 = vmatpush3.msra.mxu1 %v2806_v2 }
 0x17f   : > { %3961 = vmatprep.subr.mxu1 %v2821_v59  ;;  %3050 = vmatmul.mubr.f32.gmra.mxu1 %v5707_v15  ;;  %v2818_v15 = vld [vmem:[%s6198_s5 + $0x380] sm:$0xff] }
 0x180   : > { %3962 = vmatpush3.msra.mxu1 %v2805_v40  ;;  %3054 = vmatprep.mubr.f32.mxu1 %v5844_v12 }
 0x181   : > { %3963 = vmatprep.subr.mxu1 %v2820_v10 }
 0x182   : > { %3964 = vmatpush3.msra.mxu1 %v2804_v56 }
 0x183   : > { %3965 = vmatprep.subr.mxu1 %v2819_v9  ;;  %3055 = vmatmul.mubr.f32.gmra.mxu1 %v5759_v31  ;;  %v3418_v31 = vld [vmem:[%s6201_s8 + $0x28] sm:$0xff] }
 0x184   : > { %3966 = vmatpush3.msra.mxu1 %v2803_v28  ;;  %3229 = vmatprep.mubr.f32.mxu1 %v5436_v20  ;;  %v3428_v20 = vld [vmem:[%s6201_s8 + $0x78] sm:$0xff] }
 0x185   : > { %3967 = vmatprep.subr.mxu1 %v2818_v15 }
 0x186   : > { %3968 = vmatpush3.msra.mxu1 %v2802_v63 }
 0x187   : > { %3230 = vmatmul.mubr.f32.vlgmr.msra.gmra.mxu1 %v5438_v1  ;;  %v3427_v1 = vld [vmem:[%s6201_s8 + $0x70] sm:$0xff]  ;;  %4156 = vmatprep.subr.mxu1 %v3428_v20 }
 0x188   : > { %3234 = vmatprep.mubr.f32.mxu1 %v5544_v51  ;;  %4157 = vmatpush3.msra.mxu1 %v3428_v20  ;;  %v3425_v51 = vld [vmem:[%s6201_s8 + $0x60] sm:$0xff] }
 0x189   : > { %4158 = vmatprep.subr.mxu1 %v3427_v1 }
 0x18a   : > { %4159 = vmatpush3.msra.mxu1 %v3427_v1 }
 0x18b   : > { %3235 = vmatmul.mubr.f32.gmra.mxu1 %v5500_v62  ;;  %v3426_v62 = vld [vmem:[%s6201_s8 + $0x68] sm:$0xff] }
 0x18c   : > { %3239 = vmatprep.mubr.f32.mxu1 %v5630_v42  ;;  %4160 = vmatprep.subr.mxu1 %v3426_v62  ;;  %v3423_v42 = vld [vmem:[%s6201_s8 + $0x50] sm:$0xff] }
 0x18d   : > { %4161 = vmatpush3.msra.mxu1 %v3426_v62 }
 0x18e   : > { %4162 = vmatprep.subr.mxu1 %v3425_v51 }
 0x18f   : > { %3240 = vmatmul.mubr.f32.gmra.mxu1 %v5612_v0  ;;  %v3424_v0 = vld [vmem:[%s6201_s8 + $0x58] sm:$0xff] }
 0x190   : > { %3244 = vmatprep.mubr.f32.mxu1 %v5705_v7  ;;  %4163 = vmatpush3.msra.mxu1 %v3425_v51  ;;  %v3421_v7 = vld [vmem:[%s6201_s8 + $0x40] sm:$0xff] }
 0x191   : > { %4164 = vmatprep.subr.mxu1 %v3424_v0 }
 0x192   : > { %4165 = vmatpush3.msra.mxu1 %v3424_v0 }
 0x193   : > { %3245 = vmatmul.mubr.f32.gmra.mxu1 %v5673_v46  ;;  %4166 = vmatprep.subr.mxu1 %v3423_v42  ;;  %v3422_v46 = vld [vmem:[%s6201_s8 + $0x48] sm:$0xff] }
 0x194   : > { %3249 = vmatprep.mubr.f32.mxu1 %v5757_v38  ;;  %4167 = vmatpush3.msra.mxu1 %v3423_v42  ;;  %v3419_v38 = vld [vmem:[%s6201_s8 + $0x30] sm:$0xff] }
 0x195   : > { %4168 = vmatprep.subr.mxu1 %v3422_v46 }
 0x196   : > { %4169 = vmatpush3.msra.mxu1 %v3422_v46 }
 0x197   : > { %3250 = vmatmul.mubr.f32.gmra.mxu1 %v5737_v34  ;;  %4170 = vmatprep.subr.mxu1 %v3421_v7  ;;  %v3420_v34 = vld [vmem:[%s6201_s8 + $0x38] sm:$0xff] }
 0x198   : > { %3254 = vmatprep.mubr.f32.mxu1 %v5795_v36  ;;  %4171 = vmatpush3.msra.mxu1 %v3421_v7  ;;  %v3416_v36 = vld [vmem:[%s6201_s8 + $0x18] sm:$0xff] }
 0x199   : > { %4172 = vmatprep.subr.mxu1 %v3420_v34 }
 0x19a   : > { %4173 = vmatpush3.msra.mxu1 %v3420_v34 }
 0x19b   : > { %3255 = vmatmul.mubr.f32.gmra.mxu1 %v5776_v3  ;;  %4174 = vmatprep.subr.mxu1 %v3419_v38  ;;  %v3417_v3 = vld [vmem:[%s6201_s8 + $0x20] sm:$0xff] }
 0x19c   : > { %3259 = vmatprep.mubr.f32.mxu1 %v5850_v5  ;;  %4175 = vmatpush3.msra.mxu1 %v3419_v38 }
 0x19d   : > { %4176 = vmatprep.subr.mxu1 %v3418_v31 }
 0x19e   : > { %4177 = vmatpush3.msra.mxu1 %v3418_v31 }
 0x19f   : > { %3260 = vmatmul.mubr.f32.gmra.mxu1 %v5844_v12  ;;  %4178 = vmatprep.subr.mxu1 %v3417_v3 }
 0x1a0   : > { %3264 = vmatprep.mubr.f32.mxu1 %v2686_v17  ;;  %4179 = vmatpush3.msra.mxu1 %v3417_v3 }
 0x1a1   : > { %4180 = vmatprep.subr.mxu1 %v3416_v36 }
 0x1a2   : > { %4181 = vmatpush3.msra.mxu1 %v3416_v36 }
 0x1a3   : > { %3265 = vmatmul.mubr.f32.gmra.mxu1 %v2668_v27  ;;  %4182 = vmatprep.subr.mxu1 %v3415_v50 }
 0x1a4   : > { %4183 = vmatpush3.msra.mxu1 %v3415_v50 }
 0x1a5   : > { %4184 = vmatprep.subr.mxu1 %v3414_v19 }
 0x1a6   : > { %4185 = vmatpush3.msra.mxu1 %v3414_v19 }
 0x1a7   : > { %4186 = vmatprep.subr.mxu1 %v3413_v44 }
 0x1a8   : > { %4187 = vmatpush3.msra.mxu1 %v3413_v44 }
 0x1d2   : > { %v3801_v24 = vpop.f32.mrf.mxu1 }
 0x1d4   : > { %v3802_v11 = vpop.f32.mrf.mxu1 }
 0x1d5   : > { %v3803_v63 = vadd.f32 %v3802_v11, %v3801_v24 }
 0x1e1   : > { %v3913_v16 = vpop.f32.mrf.mxu0 }
 0x1e2   : > { %v3804_v33 = vpop.f32.mrf.mxu1 }
 0x1e3   : > { %v3914_v29 = vpop.f32.mrf.mxu0 }
 0x1e4   : > { %v3805_v26 = vpop.f32.mrf.mxu1  ;;  %v3915_v42 = vadd.f32 %v3914_v29, %v3913_v16 }
 0x1e5   : > { %v3806_v46 = vadd.f32 %v3805_v26, %v3804_v33 }
 0x1f0   : > { %v3916_v55 = vpop.f32.mrf.mxu0 }
 0x1f1   : > { %v3807_v12 = vpop.f32.mrf.mxu1 }
 0x1f2   : > { %v3917_v14 = vpop.f32.mrf.mxu0 }
 0x1f3   : > { %v3808_v54 = vpop.f32.mrf.mxu1  ;;  %v3918_v44 = vadd.f32 %v3917_v14, %v3916_v55 }
 0x1f4   : > { %v3809_v50 = vadd.f32 %v3808_v54, %v3807_v12  ;;  %v6114_v12 = vld [vmem:[%s6200_s7] ss:$0 sm:$0xff] }
 0x1fd   : > { %v6056_v49 = vpop.f32.mrf.mxu1  ;;  %v3919_v13 = vpop.f32.mrf.mxu0 }
 0x1ff   : > { %v6058_v5 = vpop.f32.mrf.mxu1  ;;  %v3920_v8 = vpop.f32.mrf.mxu0 }
 0x200   : > { %v3921_v29 = vadd.f32 %v3920_v8, %v3919_v13 }
 0x207   : > { %v6074_v45 = vpop.f32.mrf.mxu0 }
 0x208   : > { %v6060_v53 = vpop.f32.mrf.mxu1 }
 0x209   : > { %v6078_v17 = vpop.f32.mrf.mxu0 }
 0x20a   : > { %v6062_v60 = vpop.f32.mrf.mxu1 }
 0x20b   : > { %v3815_v8 = vadd.f32 %v6062_v60, %v6060_v53 }
 0x211   : > { %v6080_v35 = vpop.f32.mrf.mxu0 }
 0x212   : > { %v6064_v39 = vpop.f32.mrf.mxu1 }
 0x213   : > { %v6082_v61 = vpop.f32.mrf.mxu0 }
 0x214   : > { %v6066_v32 = vpop.f32.mrf.mxu1  ;;  %v3927_v53 = vadd.f32 %v6082_v61, %v6080_v35 }
 0x21b   : > { %v6084_v52 = vpop.f32.mrf.mxu0 }
 0x21c   : > { %v6068_v30 = vpop.f32.mrf.mxu1 }
 0x21d   : > { %v6086_v6 = vpop.f32.mrf.mxu0 }
 0x21e   : > { %v6070_v22 = vpop.f32.mrf.mxu1 }
 0x21f   : > { %v3821_v35 = vadd.f32 %v6070_v22, %v6068_v30 }
 0x221   : > { %v6088_v4 = vpop.f32.mrf.mxu0 }
 0x222   : > { %v6072_v27 = vpop.f32.mrf.mxu1 }
 0x223   : > { %v6090_v40 = vpop.f32.mrf.mxu0 }
 0x224   : > { %v6076_v21 = vpop.f32.mrf.mxu1  ;;  %v3933_v30 = vadd.f32 %v6090_v40, %v6088_v4 }
 0x226   : > { %v3857_v23 = vpop.f32.mrf.mxu1 }
 0x228   : > { %v3858_v25 = vpop.f32.mrf.mxu1 }
 0x229   : > { %v6094_v56 = vpop.f32.mrf.mxu0  ;;  %v3859_v28 = vadd.f32 %v3858_v25, %v3857_v23 }
 0x22b   : > { %v3860_v58 = vpop.f32.mrf.mxu1  ;;  %v6100_v20 = vpop.f32.mrf.mxu0  ;;  %v3022_v62 = vadd.f32 %v3859_v28, %v3803_v63 }
 0x22c   : > { %6285 = vst [vmem:[#allocation2_spill] sm:$0xff] %v6100_v20 }
 0x22d   : > { %v3861_v41 = vpop.f32.mrf.mxu1  ;;  %v4146_v7 = vpop.f32.mrf.mxu0  ;;  %v3127_v3 = vadd.f32 %v3915_v42, %v3022_v62 }
 0x22e   : > { %v3862_v51 = vadd.f32 %v3861_v41, %v3860_v58  ;;  %v6107_v58 = vld [vmem:[%s6199_s6] ss:$0 sm:$0xff]  ;;  %v3812_v41 = vadd.f32 %v6058_v5, %v6056_v49  ;;  %v3924_v49 = vadd.f32 %v6078_v17, %v6074_v45  ;;  %v3818_v45 = vadd.f32 %v6066_v32, %v6064_v39 }
 0x22f   : > { %v3863_v37 = vpop.f32.mrf.mxu1  ;;  %v3336_v24 = vpop.f32.mrf.mxu0  ;;  %v3930_v32 = vadd.f32 %v6086_v6, %v6084_v52  ;;  %v3824_v6 = vadd.f32 %v6076_v21, %v6072_v27 }
 0x230   : > { %v3027_v31 = vadd.f32 %v3862_v51, %v3806_v46 }
 0x231   : > { %v3864_v18 = vpop.f32.mrf.mxu1 }
 0x232   : > { %v3865_v34 = vadd.f32 %v3864_v18, %v3863_v37  ;;  %v3132_v26 = vadd.f32 %v3918_v44, %v3027_v31  ;;  %v4149_v37 = vpop.f32.mrf.mxu0 }
 0x233   : > { %v3866_v47 = vpop.f32.mrf.mxu1  ;;  %v6286_v4 = vld [vmem:[#allocation2_spill] sm:$0xff] }
 0x234   : > { %v3032_v11 = vadd.f32 %v3865_v34, %v3809_v50  ;;  %v3346_v42 = vpop.f32.mrf.mxu0  ;;  %v3936_v40 = vadd.f32 %v6286_v4, %v6094_v56 }
 0x235   : > { %v3867_v43 = vpop.f32.mrf.mxu1 }
 0x236   : > { %v3868_v25 = vadd.f32 %v3867_v43, %v3866_v47  ;;  %v3137_v47 = vadd.f32 %v3921_v29, %v3032_v11 }
 0x237   : > { %v3869_v57 = vpop.f32.mrf.mxu1 }
 0x238   : > { %v3037_v18 = vadd.f32 %v3868_v25, %v3812_v41 }
 0x239   : > { %v3870_v48 = vpop.f32.mrf.mxu1 }
 0x23a   : > { %v3871_v28 = vadd.f32 %v3870_v48, %v3869_v57  ;;  %v3142_v34 = vadd.f32 %v3924_v49, %v3037_v18 }
 0x23b   : > { %v3872_v2 = vpop.f32.mrf.mxu1 }
 0x23c   : > { %v3042_v57 = vadd.f32 %v3871_v28, %v3815_v8 }
 0x23d   : > { %v3873_v59 = vpop.f32.mrf.mxu1 }
 0x23e   : > { %v3874_v46 = vadd.f32 %v3873_v59, %v3872_v2  ;;  %v4152_v2 = vpop.f32.mrf.mxu0 }
 0x23f   : > { %v6092_v10 = vpop.f32.mrf.mxu1 }
 0x240   : > { %v3047_v59 = vadd.f32 %v3874_v46, %v3818_v45  ;;  %v6287_v45 = vmov 0.0  }
 0x241   : > { %v6096_v9 = vpop.f32.mrf.mxu1  ;;  %3576 = vst [vmem:[%s6158_s30] sm:$0x1] %v6287_v45 }
 0x242   : > { %v3877_v50 = vadd.f32 %v6096_v9, %v6092_v10  ;;  %v3152_v9 = vadd.f32 %v3930_v32, %v3047_v59 }
 0x243   : > { %v6098_v15 = vpop.f32.mrf.mxu1 }
 0x244   : > { %v3052_v10 = vadd.f32 %v3877_v50, %v3821_v35 }
 0x245   : > { %v6102_v1 = vpop.f32.mrf.mxu1 }
 0x246   : > { %v3880_v29 = vadd.f32 %v6102_v1, %v6098_v15 }
 0x247   : > { %v3969_v0 = vpop.f32.mrf.mxu1 }
 0x248   : > { %v3057_v15 = vadd.f32 %v3880_v29, %v3824_v6 }
 0x249   : > { %v3970_v38 = vpop.f32.mrf.mxu1 }
 0x24a   : > { %v3971_v36 = vadd.f32 %v3970_v38, %v3969_v0 }
 0x24b   : > { %v3972_v19 = vpop.f32.mrf.mxu1 }
 0x24c   : > { %v3232_v23 = vadd.f32 %v3971_v36, %v3127_v3 }
 0x24d   : > { %v3973_v20 = vpop.f32.mrf.mxu1 }
 0x24e   : > { %v3337_v33 = vadd.f32 %v3336_v24, %v3232_v23  ;;  %v3974_v16 = vadd.f32 %v3973_v20, %v3972_v19  ;;  %v3147_v23 = vadd.f32 %v3927_v53, %v3042_v57 }
 0x24f   : > { %v3975_v54 = vpop.f32.mrf.mxu1 }
 0x250   : > { %v3237_v55 = vadd.f32 %v3974_v16, %v3132_v26  ;;  %v3382_v14 = vmul.f32 %v6107_v58, %v3337_v33  ;;  %v3356_v26 = vpop.f32.mrf.mxu0 }
 0x251   : > { %v3976_v43 = vpop.f32.mrf.mxu1 }
 0x252   : > { %v3342_v63 = vadd.f32 %v4146_v7, %v3237_v55  ;;  %v3977_v20 = vadd.f32 %v3976_v43, %v3975_v54  ;;  %v3397_v13 = vadd.f32 %v6114_v12, %v3382_v14  ;;  %v4155_v18 = vpop.f32.mrf.mxu0 }
 0x253   : > { %v3978_v5 = vpop.f32.mrf.mxu1 }
 0x254   : > { %v3383_v62 = vmul.f32 %v6107_v58, %v3342_v63  ;;  %v3242_v51 = vadd.f32 %v3977_v20, %v3137_v47  ;;  %v3405_v0 = vmax.f32 %v3397_v13, 0.0  ;;  %v3157_v47 = vadd.f32 %v3933_v30, %v3052_v10  ;;  %v3366_v21 = vpop.f32.mrf.mxu0 }
 0x255   : > { %v3979_v38 = vpop.f32.mrf.mxu1 }
 0x256   : > { %v3398_v48 = vadd.f32 %v6114_v12, %v3383_v62  ;;  %v3347_v7 = vadd.f32 %v3346_v42, %v3242_v51  ;;  %v3980_v31 = vadd.f32 %v3979_v38, %v3978_v5  ;;  %4188 = vmatprep.mubr.f32.mxu1 %v3405_v0  ;;  %v3162_v62 = vadd.f32 %v3936_v40, %v3057_v15  ;;  %v3577_v15 = vld [vmem:[%s6158_s30] sm:$0x1] }
 0x257   : > { %v3981_v17 = vpop.f32.mrf.mxu1 }
 0x258   : > { %v3406_v60 = vmax.f32 %v3398_v48, 0.0  ;;  %v3247_v3 = vadd.f32 %v3980_v31, %v3142_v34  ;;  %v3384_v36 = vmul.f32 %v6107_v58, %v3347_v7 }
 0x259   : > { %v3982_v19 = vpop.f32.mrf.mxu1 }
 0x25a   : > { %v3352_v44 = vadd.f32 %v4149_v37, %v3247_v3  ;;  %v3983_v24 = vadd.f32 %v3982_v19, %v3981_v17  ;;  %4189 = vmatmul.mubr.f32.vlgmr.msra.gmra.mxu1 %v3406_v60  ;;  %v3399_v39 = vadd.f32 %v6114_v12, %v3384_v36  ;;  %v3735_v17 = vld [vmem:[%s6202_s9] ss:$0 sm:$0xff] }
 0x25b   : > { %v3984_v61 = vpop.f32.mrf.mxu1 }
 0x25c   : > { %v3252_v11 = vadd.f32 %v3983_v24, %v3147_v23  ;;  %v3407_v25 = vmax.f32 %v3399_v39, 0.0  ;;  %v3385_v33 = vmul.f32 %v6107_v58, %v3352_v44 }
 0x25d   : > { %v3985_v16 = vpop.f32.mrf.mxu1 }
 0x25e   : > { %v3357_v41 = vadd.f32 %v3356_v26, %v3252_v11  ;;  %v3986_v54 = vadd.f32 %v3985_v16, %v3984_v61  ;;  %4191 = vmatprep.mubr.f32.mxu1 %v3407_v25  ;;  %v3400_v52 = vadd.f32 %v6114_v12, %v3385_v33 }
 0x25f   : > { %v3987_v22 = vpop.f32.mrf.mxu1 }
 0x260   : > { %v3257_v55 = vadd.f32 %v3986_v54, %v3152_v9  ;;  %v3408_v14 = vmax.f32 %v3400_v52, 0.0  ;;  %v3386_v37 = vmul.f32 %v6107_v58, %v3357_v41 }
 0x261   : > { %v3988_v43 = vpop.f32.mrf.mxu1 }
 0x262   : > { %v3362_v1 = vadd.f32 %v4152_v2, %v3257_v55  ;;  %v3989_v28 = vadd.f32 %v3988_v43, %v3987_v22  ;;  %4192 = vmatmul.mubr.f32.gmra.mxu1 %v3408_v14  ;;  %v3401_v63 = vadd.f32 %v6114_v12, %v3386_v37 }
 0x263   : > { %v3990_v20 = vpop.f32.mrf.mxu1 }
 0x264   : > { %v3262_v13 = vadd.f32 %v3989_v28, %v3157_v47  ;;  %v3409_v49 = vmax.f32 %v3401_v63, 0.0  ;;  %v3387_v27 = vmul.f32 %v6107_v58, %v3362_v1 }
 0x265   : > { %v3991_v5 = vpop.f32.mrf.mxu1 }
 0x266   : > { %v3367_v8 = vadd.f32 %v3366_v21, %v3262_v13  ;;  %v3992_v51 = vadd.f32 %v3991_v5, %v3990_v20  ;;  %4194 = vmatprep.mubr.f32.mxu1 %v3409_v49  ;;  %v3402_v0 = vadd.f32 %v6114_v12, %v3387_v27 }
 0x268   : > { %v3267_v42 = vadd.f32 %v3992_v51, %v3162_v62  ;;  %v3410_v46 = vmax.f32 %v3402_v0, 0.0  ;;  %v3388_v34 = vmul.f32 %v6107_v58, %v3367_v8 }
 0x26a   : > { %v3372_v38 = vadd.f32 %v4155_v18, %v3267_v42  ;;  %4195 = vmatmul.mubr.f32.gmra.mxu1 %v3410_v46  ;;  %v3403_v56 = vadd.f32 %v6114_v12, %v3388_v34 }
 0x26c   : > { %v3411_v57 = vmax.f32 %v3403_v56, 0.0  ;;  %v3389_v48 = vmul.f32 %v6107_v58, %v3372_v38  ;;  %v3736_v58 = vld [vmem:[%s6203_s10] ss:$0 sm:$0xff] }
 0x26e   : > { %4197 = vmatprep.mubr.f32.mxu1 %v3411_v57  ;;  %v3404_v7 = vadd.f32 %v6114_v12, %v3389_v48 }
 0x270   : > { %v3412_v31 = vmax.f32 %v3404_v7, 0.0 }
 0x272   : > { %4198 = vmatmul.mubr.f32.gmra.mxu1 %v3412_v31 }
 0x31a   : > { %v4190_v53 = vpop.f32.mrf.mxu1 }
 0x31b   : > { %v3542_v12 = vmul.f32 %v4190_v53, %v3735_v17 }
 0x31c   : > { %v3495_v60 = vpop.f32.mrf.mxu1 }
 0x31d   : > { %v3557_v3 = vadd.f32 %v3736_v58, %v3542_v12  ;;  %v3541_v36 = vmul.f32 %v3735_v17, %v3495_v60 }
 0x31f   : > { %3565 = vst [vmem:[%s6172_s20 + $0x8] sm:$0xff] %v3557_v3  ;;  %v3556_v2 = vadd.f32 %v3736_v58, %v3541_v36 }
 0x321   : > { %3564 = vst [vmem:[%s6172_s20] sm:$0xff] %v3556_v2  ;;  %v3578_v32 = vadd.f32 %v3557_v3, %v3556_v2 }
 0x322   : > { %v4193_v59 = vpop.f32.mrf.mxu1 }
 0x323   : > { %v3544_v50 = vmul.f32 %v4193_v59, %v3735_v17 }
 0x324   : > { %v3505_v19 = vpop.f32.mrf.mxu1 }
 0x325   : > { %v3559_v44 = vadd.f32 %v3736_v58, %v3544_v50  ;;  %v3543_v23 = vmul.f32 %v3735_v17, %v3505_v19 }
 0x327   : > { %3567 = vst [vmem:[%s6172_s20 + $0x18] sm:$0xff] %v3559_v44  ;;  %v3558_v24 = vadd.f32 %v3736_v58, %v3543_v23 }
 0x329   : > { %3566 = vst [vmem:[%s6172_s20 + $0x10] sm:$0xff] %v3558_v24  ;;  %v3579_v11 = vadd.f32 %v3578_v32, %v3558_v24 }
 0x32a   : > { %v4196_v39 = vpop.f32.mrf.mxu1 }
 0x32b   : > { %v3546_v35 = vmul.f32 %v4196_v39, %v3735_v17  ;;  %v3580_v10 = vadd.f32 %v3579_v11, %v3559_v44 }
 0x32c   : > { %v3515_v61 = vpop.f32.mrf.mxu1 }
 0x32d   : > { %v3561_v25 = vadd.f32 %v3736_v58, %v3546_v35  ;;  %v3545_v33 = vmul.f32 %v3735_v17, %v3515_v61 }
 0x32f   : > { %3569 = vst [vmem:[%s6172_s20 + $0x28] sm:$0xff] %v3561_v25  ;;  %v3560_v26 = vadd.f32 %v3736_v58, %v3545_v33 }
 0x331   : > { %3568 = vst [vmem:[%s6172_s20 + $0x20] sm:$0xff] %v3560_v26  ;;  %v3581_v16 = vadd.f32 %v3580_v10, %v3560_v26 }
 0x332   : > { %v4199_v9 = vpop.f32.mrf.mxu1 }
 0x333   : > { %v3548_v29 = vmul.f32 %v4199_v9, %v3735_v17  ;;  %v3582_v22 = vadd.f32 %v3581_v16, %v3561_v25 }
 0x334   : > { %v3525_v41 = vpop.f32.mrf.mxu1 }
 0x335   : > { %v3563_v54 = vadd.f32 %v3736_v58, %v3548_v29  ;;  %v3547_v52 = vmul.f32 %v3735_v17, %v3525_v41 }
 0x337   : > { %3571 = vst [vmem:[%s6172_s20 + $0x38] sm:$0xff] %v3563_v54  ;;  %v3562_v30 = vadd.f32 %v3736_v58, %v3547_v52 }
 0x339   : > { %3570 = vst [vmem:[%s6172_s20 + $0x30] sm:$0xff] %v3562_v30  ;;  %v3583_v6 = vadd.f32 %v3582_v22, %v3562_v30 }
 0x33b   : > { %v3584_v55 = vadd.f32 %v3583_v6, %v3563_v54 }
 0x33d   : > { %v3585_v14 = vrot.slane %v3584_v55, 4 }
 0x33f   : > { %v3586_v37 = vadd.f32 %v3585_v14, %v3584_v55 }
 0x341   : > { %v3587_v18 = vrot.slane %v3586_v37, 2 }
 0x343   : > { %v3588_v47 = vadd.f32 %v3587_v18, %v3586_v37 }
 0x345   : > { %v3589_v43 = vrot.slane %v3588_v47, 1 }
 0x347   : > { %v3590_v1 = vadd.f32 %v3589_v43, %v3588_v47 }
 0x349   : > { %v3591_v28 = vadd.f32 %v3590_v1, %v3577_v15 }
 0x34b   : > { %3592 = vst [vmem:[%s6158_s30] sm:$0x1] %v3591_v28 }
 0x34c PF: > { %s23_s23 = sadd.s32 1, %s4267_s23   ;;  %s6288_s21 = smov %s4263_s22 }
 0x34d   : > { %p20_p5 = scmp.ge.s32.totalorder %s23_s23, 4   ;;  %s6289_s22 = smov %s6291_s24 }
 0x34f   :  { %22 = sbr.rel (!%p20_p5) target bundleno = 2 (0x2), region = 112 }

</bundles_post_ra>
